<compile_context>
chip_gen: v5e
topology: v5e:2x2
jax: 0.10.0
libtpu: 0.0.40
codegen_flags: <defaults>
</compile_context>

<pallas_src>
import jax
import jax.numpy as jnp
import numpy as np
from jax.experimental import pallas as pl
from jax.experimental.pallas import tpu as pltpu

# ---- model hyper-parameters (small, consistent with the module) -------------
HIDDEN = 32      # hidden_dim
K = 3            # Chebyshev order
N = 64           # number of graph nodes
IN_DIM = 3       # input coordinates (x,y,z)
OUT_DIM = 3      # mlpRep output

LEAKY_SLOPE = 0.01
BN_EPS = 1e-5
NORM_EPS = 1e-12

# Packed vector-slab row layout: rows 0-3 = b1..b4, 4-6 = gamma1..3,
# 7-9 = beta1..3, 10 = brep (padded to HIDDEN), rows 11-15 = zero padding.
VECS_ROWS = 16


# ---------------------------- Pallas kernel ----------------------------------
def hno_kernel(L_ref, x_ref, wcat_ref, vecs_ref, wrep_ref, out_ref):
    L16 = L_ref[0]                 # [N, N] bf16 scaled Laplacian of this graph
    V = vecs_ref[...]              # [16, H] f32 packed bias / BN vectors
    h = x_ref[0]                   # [N, H] f32 (columns >= IN_DIM are zero)

    def cheb_layer(h, layer):
        # ChebConv: sum_k T_k(L_hat) x W_k + b.
        # The K matmuls against W_k are fused into one (N,K*H)x(K*H,H) matmul;
        # K*H = 96 <= 128 so Txcat stays within a single lane tile.
        Txs = [h]
        if K > 1:
            Txs.append(jnp.dot(L16, h.astype(jnp.bfloat16),
                               preferred_element_type=jnp.float32))
        for _ in range(2, K):      # K is a static Python int
            Txs.append(2.0 * jnp.dot(L16, Txs[-1].astype(jnp.bfloat16),
                                     preferred_element_type=jnp.float32)
                       - Txs[-2])
        Txcat = jnp.concatenate(Txs, axis=-1).astype(jnp.bfloat16)   # [N, K*H]
        out = jnp.dot(Txcat, wcat_ref[layer],
                      preferred_element_type=jnp.float32)            # [N, H]
        return out + V[layer:layer + 1, :]                           # + bias

    def batchnorm(h, layer):
        # BatchNorm1d, training mode: biased batch stats, single pass.
        m = jnp.mean(h, axis=0, keepdims=True)
        var = jnp.maximum(jnp.mean(h * h, axis=0, keepdims=True) - m * m, 0.0)
        gamma = V[4 + layer:5 + layer, :]
        beta = V[7 + layer:8 + layer, :]
        return (h - m) * jax.lax.rsqrt(var + BN_EPS) * gamma + beta

    def leaky_relu(t):
        return jnp.where(t > 0, t, LEAKY_SLOPE * t)

    h = batchnorm(leaky_relu(cheb_layer(h, 0)), 0)
    h = batchnorm(leaky_relu(cheb_layer(h, 1)), 1)
    h = batchnorm(jnp.maximum(cheb_layer(h, 2), 0.0), 2)   # relu before bano3
    h = cheb_layer(h, 3)

    # F.normalize(p=2, dim=1): x / max(||x||, eps) == x * rsqrt(max(||x||^2, eps^2))
    sq = jnp.sum(h * h, axis=1, keepdims=True)
    h = h * jax.lax.rsqrt(jnp.maximum(sq, NORM_EPS * NORM_EPS))

    # mlpRep: Linear(hidden_dim, 3); wrep/brep are lane-padded 3 -> HIDDEN so
    # the store stays 32 lanes wide; the 3 real output columns are sliced off
    # outside the kernel.
    out_ref[0] = (jnp.dot(h, wrep_ref[...], preferred_element_type=jnp.float32)
                  + V[10:11, :])


# ------------------------- parameter packing (glue) ---------------------------
def pack_params(p):
    """Pack the module parameters into 3 DMA-friendly slabs."""
    w1_pad = jnp.zeros((K, HIDDEN, HIDDEN), jnp.float32).at[:, :IN_DIM, :].set(
        p["w1"])
    wcat = jnp.stack([w1_pad.reshape(K * HIDDEN, HIDDEN),
                      p["w2"].reshape(K * HIDDEN, HIDDEN),
                      p["w3"].reshape(K * HIDDEN, HIDDEN),
                      p["w4"].reshape(K * HIDDEN, HIDDEN)],
                     axis=0).astype(jnp.bfloat16)              # [4, K*H, H]

    brep_pad = jnp.zeros((HIDDEN,), jnp.float32).at[:OUT_DIM].set(p["brep"])
    rows = [p["b1"], p["b2"], p["b3"], p["b4"],
            p["g1"], p["g2"], p["g3"],
            p["be1"], p["be2"], p["be3"],
            brep_pad]
    vecs = jnp.zeros((VECS_ROWS, HIDDEN), jnp.float32).at[:len(rows)].set(
        jnp.stack(rows, axis=0))                               # [16, H]

    wrep_pad = jnp.zeros((HIDDEN, HIDDEN), jnp.float32).at[:, :OUT_DIM].set(
        p["wrep"])                                             # [H, H]
    return wcat, vecs, wrep_pad


# ------------------------------ wrapper ---------------------------------------
def hno_forward(L_hats, xs, params):
    """Batched HNO forward.

    L_hats: [B, N, N] f32 dense scaled Laplacians (-D^-1/2 A D^-1/2).
    xs:     [B, N, 3] node coordinates.
    Returns [B, N, 3].
    """
    B = L_hats.shape[0]
    wcat16, vecs, wrep_pad = pack_params(params)
    L16 = L_hats.astype(jnp.bfloat16)
    x_pad = jnp.zeros((B, N, HIDDEN), jnp.float32).at[:, :, :IN_DIM].set(
        xs.astype(jnp.float32))

    flops = B * (4 * ((K - 1) * 2 * N * N * HIDDEN
                      + 2 * N * (K * HIDDEN) * HIDDEN)
                 + 2 * N * HIDDEN * HIDDEN)
    bytes_accessed = (B * (N * N * 2 + 2 * N * HIDDEN * 4)
                      + 4 * K * HIDDEN * HIDDEN * 2
                      + VECS_ROWS * HIDDEN * 4 + HIDDEN * HIDDEN * 4)
    cost = pl.CostEstimate(flops=flops,
                           transcendentals=B * (3 * HIDDEN + N),
                           bytes_accessed=bytes_accessed)

    # TODO(synk): if this forward runs in a tight host loop, keep the packed
    # parameter slabs VMEM-resident via cross-call prefetch instead of
    # re-DMA-ing them every call.
    out = pl.pallas_call(
        hno_kernel,
        out_shape=jax.ShapeDtypeStruct((B, N, HIDDEN), jnp.float32),
        grid_spec=pltpu.PrefetchScalarGridSpec(
            num_scalar_prefetch=0,
            grid=(B,),  # one independent graph per grid step
            in_specs=[
                pl.BlockSpec((1, N, N), lambda b: (b, 0, 0)),            # L_hat
                pl.BlockSpec((1, N, HIDDEN), lambda b: (b, 0, 0)),       # x
                pl.BlockSpec((4, K * HIDDEN, HIDDEN), lambda b: (0, 0, 0)),
                pl.BlockSpec((VECS_ROWS, HIDDEN), lambda b: (0, 0)),
                pl.BlockSpec((HIDDEN, HIDDEN), lambda b: (0, 0)),
            ],
            out_specs=pl.BlockSpec((1, N, HIDDEN), lambda b: (b, 0, 0)),
        ),
        compiler_params=pltpu.CompilerParams(
            dimension_semantics=("parallel",)),   # megacore-shard the batch
        cost_estimate=cost,
    )(L16, x_pad, wcat16, vecs, wrep_pad)
    return out[:, :, :OUT_DIM]


# --------------------------- plain-JAX glue -----------------------------------
def build_scaled_laplacian(edge_index, num_nodes):
    # Dense L_hat = -D^{-1/2} A D^{-1/2}  (ChebConv, sym norm, lambda_max=2)
    src, dst = edge_index
    A = jnp.zeros((num_nodes, num_nodes), jnp.float32)
    A = A.at[dst, src].set(1.0)            # out[i] aggregates x_j over j->i
    deg = jnp.sum(A, axis=1)
    dinv = jnp.where(deg > 0, 1.0 / jnp.sqrt(deg), 0.0)
    return -(dinv[:, None] * A * dinv[None, :])


def make_graph_edges(key, n=N, n_extra=16):
    # undirected ring + a few random chords (deterministic per key)
    ring_src = np.arange(n)
    ring_dst = (np.arange(n) + 1) % n
    extra_src = np.asarray(jax.random.randint(key, (n_extra,), 0, n))
    extra_dst = (extra_src + 7) % n
    src = np.concatenate([ring_src, ring_dst, extra_src, extra_dst])
    dst = np.concatenate([ring_dst, ring_src, extra_dst, extra_src])
    keep = src != dst
    return jnp.asarray(np.stack([src[keep], dst[keep]]), dtype=jnp.int32)


def init_params(key):
    def glorot(k, shape):
        fan_in, fan_out = shape[-2], shape[-1]
        lim = np.sqrt(6.0 / (fan_in + fan_out))
        return jax.random.uniform(k, shape, jnp.float32, -lim, lim)

    ks = jax.random.split(key, 16)
    lim = 1.0 / np.sqrt(HIDDEN)
    return {
        "w1": glorot(ks[0], (K, IN_DIM, HIDDEN)),
        "w2": glorot(ks[1], (K, HIDDEN, HIDDEN)),
        "w3": glorot(ks[2], (K, HIDDEN, HIDDEN)),
        "w4": glorot(ks[3], (K, HIDDEN, HIDDEN)),
        "b1": 0.1 * jax.random.normal(ks[4], (HIDDEN,), jnp.float32),
        "b2": 0.1 * jax.random.normal(ks[5], (HIDDEN,), jnp.float32),
        "b3": 0.1 * jax.random.normal(ks[6], (HIDDEN,), jnp.float32),
        "b4": 0.1 * jax.random.normal(ks[7], (HIDDEN,), jnp.float32),
        "g1": 1.0 + 0.1 * jax.random.normal(ks[8], (HIDDEN,), jnp.float32),
        "g2": 1.0 + 0.1 * jax.random.normal(ks[9], (HIDDEN,), jnp.float32),
        "g3": 1.0 + 0.1 * jax.random.normal(ks[10], (HIDDEN,), jnp.float32),
        "be1": 0.1 * jax.random.normal(ks[11], (HIDDEN,), jnp.float32),
        "be2": 0.1 * jax.random.normal(ks[12], (HIDDEN,), jnp.float32),
        "be3": 0.1 * jax.random.normal(ks[13], (HIDDEN,), jnp.float32),
        "wrep": jax.random.uniform(ks[14], (HIDDEN, OUT_DIM), jnp.float32, -lim, lim),
        "brep": jax.random.uniform(ks[15], (OUT_DIM,), jnp.float32, -lim, lim),
    }


def reference_forward(L_hat, x, p, use_bf16):
    """Pure-JAX reference for a single graph.

    use_bf16=True mirrors the kernel's precision policy (bf16 matmul inputs,
    f32 accumulation); use_bf16=False is the full-f32 module math.
    """
    dt = jnp.bfloat16 if use_bf16 else jnp.float32
    Lc = L_hat.astype(dt)

    def cheb(h, w, b):
        wc = w.astype(dt)
        Txs = [h]
        if K > 1:
            Txs.append(jnp.dot(Lc, h.astype(dt),
                               preferred_element_type=jnp.float32))
        for _ in range(2, K):
            Txs.append(2.0 * jnp.dot(Lc, Txs[-1].astype(dt),
                                     preferred_element_type=jnp.float32)
                       - Txs[-2])
        out = sum(jnp.dot(Txs[k].astype(dt), wc[k],
                          preferred_element_type=jnp.float32)
                  for k in range(K))
        return out + b[None, :]

    def bn(h, g, be):
        m = jnp.mean(h, axis=0, keepdims=True)
        v = jnp.mean((h - m) ** 2, axis=0, keepdims=True)
        return (h - m) / jnp.sqrt(v + BN_EPS) * g[None, :] + be[None, :]

    lrelu = lambda t: jnp.where(t > 0, t, LEAKY_SLOPE * t)

    h = x.astype(jnp.float32)
    h = bn(lrelu(cheb(h, p["w1"], p["b1"])), p["g1"], p["be1"])
    h = bn(lrelu(cheb(h, p["w2"], p["b2"])), p["g2"], p["be2"])
    h = bn(jnp.maximum(cheb(h, p["w3"], p["b3"]), 0.0), p["g3"], p["be3"])
    h = cheb(h, p["w4"], p["b4"])
    h = h / jnp.maximum(jnp.linalg.norm(h, axis=1, keepdims=True), NORM_EPS)
    return h @ p["wrep"] + p["brep"][None, :]


if __name__ == "__main__":
    key = jax.random.PRNGKey(0)
    k_x, k_e, k_p = jax.random.split(key, 3)

    B = 2  # batch of independent graphs -> "parallel" grid axis (megacore)
    xs = jax.random.normal(k_x, (B, N, IN_DIM), jnp.float32)

    edge_keys = jax.random.split(k_e, B)
    L_hats = jnp.stack(
        [build_scaled_laplacian(make_graph_edges(edge_keys[b]), N)
         for b in range(B)], axis=0)

    params = init_params(k_p)

    out = jax.block_until_ready(hno_forward(L_hats, xs, params))
    assert out.shape == (B, N, OUT_DIM)

    for b in range(B):
        # Tight check against a matched-precision (bf16-matmul) reference.
        ref16 = reference_forward(L_hats[b], xs[b], params, use_bf16=True)
        np.testing.assert_allclose(np.asarray(out[b]), np.asarray(ref16),
                                   atol=5e-3, rtol=5e-3)
        # Coarse sanity check against the full-f32 module math
        # (difference is bf16 matmul quantization noise only).
        ref32 = reference_forward(L_hats[b], xs[b], params, use_bf16=False)
        np.testing.assert_allclose(np.asarray(out[b]), np.asarray(ref32),
                                   atol=0.25, rtol=0.25)

    print("KERNEL_OK")
</pallas_src>

<mosaic_0001>
module attributes {stable_mosaic.version = 11 : i64} {
  func.func @hno_kernel(%arg0: i32, %arg1: memref<1x64x64xbf16, #tpu.memory_space<vmem>>, %arg2: memref<1x64x32xf32, #tpu.memory_space<vmem>>, %arg3: memref<4x96x32xbf16, #tpu.memory_space<vmem>>, %arg4: memref<16x32xf32, #tpu.memory_space<vmem>>, %arg5: memref<32x32xf32, #tpu.memory_space<vmem>>, %arg6: memref<1x64x32xf32, #tpu.memory_space<vmem>>) attributes {dimension_semantics = [#tpu.dimension_semantics<parallel>], iteration_bounds = array<i64: 2>, scalar_prefetch = 0 : i64, scratch_operands = 0 : i64, tpu.core_type = #tpu.core_type<tc>, window_params = [{transform_indices = @transform_0, window_bounds = array<i64: 1, 64, 64>}, {transform_indices = @transform_1, window_bounds = array<i64: 1, 64, 32>}, {pipeline_mode = #tpu.pipeline_mode<synchronous>, transform_indices = @transform_2, window_bounds = array<i64: 4, 96, 32>}, {pipeline_mode = #tpu.pipeline_mode<synchronous>, transform_indices = @transform_3, window_bounds = array<i64: 16, 32>}, {pipeline_mode = #tpu.pipeline_mode<synchronous>, transform_indices = @transform_4, window_bounds = array<i64: 32, 32>}, {transform_indices = @transform_5, window_bounds = array<i64: 1, 64, 32>}]} {
    %c0 = arith.constant 0 : index
    %c0_0 = arith.constant 0 : index
    %c0_1 = arith.constant 0 : index
    %0 = vector.load %arg1[%c0, %c0_0, %c0_1] : memref<1x64x64xbf16, #tpu.memory_space<vmem>>, vector<1x64x64xbf16>
    %1 = vector.shape_cast %0 : vector<1x64x64xbf16> to vector<64x64xbf16>
    %c0_2 = arith.constant 0 : index
    %c0_3 = arith.constant 0 : index
    %2 = vector.load %arg4[%c0_2, %c0_3] : memref<16x32xf32, #tpu.memory_space<vmem>>, vector<16x32xf32>
    %c0_4 = arith.constant 0 : index
    %c0_5 = arith.constant 0 : index
    %c0_6 = arith.constant 0 : index
    %3 = vector.load %arg2[%c0_4, %c0_5, %c0_6] : memref<1x64x32xf32, #tpu.memory_space<vmem>>, vector<1x64x32xf32>
    %4 = vector.shape_cast %3 : vector<1x64x32xf32> to vector<64x32xf32>
    %5 = arith.truncf %4 : vector<64x32xf32> to vector<64x32xbf16>
    %cst = arith.constant dense<0.000000e+00> : vector<64x32xf32>
    %6 = tpu.matmul %1, %5, %cst {dimension_numbers = #tpu.dot_dimension_numbers<[1], [0], [0], [1], [0, 0, 1, 1], [], []>} : vector<64x64xbf16>, vector<64x32xbf16>, vector<64x32xf32> -> vector<64x32xf32>
    %7 = arith.truncf %6 : vector<64x32xf32> to vector<64x32xbf16>
    %cst_7 = arith.constant dense<0.000000e+00> : vector<64x32xf32>
    %8 = tpu.matmul %1, %7, %cst_7 {dimension_numbers = #tpu.dot_dimension_numbers<[1], [0], [0], [1], [0, 0, 1, 1], [], []>} : vector<64x64xbf16>, vector<64x32xbf16>, vector<64x32xf32> -> vector<64x32xf32>
    %cst_8 = arith.constant 2.000000e+00 : f32
    %9 = vector.broadcast %cst_8 : f32 to vector<64x32xf32>
    %10 = arith.mulf %9, %8 : vector<64x32xf32>
    %11 = arith.subf %10, %4 : vector<64x32xf32>
    %12 = tpu.concatenate %4, %6, %11 in 1 : vector<64x32xf32>, vector<64x32xf32>, vector<64x32xf32> -> vector<64x96xf32>
    %13 = arith.truncf %12 : vector<64x96xf32> to vector<64x96xbf16>
    %c0_9 = arith.constant 0 : index
    %c0_10 = arith.constant 0 : index
    %c0_11 = arith.constant 0 : index
    %14 = vector.load %arg3[%c0_9, %c0_10, %c0_11] : memref<4x96x32xbf16, #tpu.memory_space<vmem>>, vector<1x96x32xbf16>
    %15 = vector.shape_cast %14 : vector<1x96x32xbf16> to vector<96x32xbf16>
    %cst_12 = arith.constant dense<0.000000e+00> : vector<64x32xf32>
    %16 = tpu.matmul %13, %15, %cst_12 {dimension_numbers = #tpu.dot_dimension_numbers<[1], [0], [0], [1], [0, 0, 1, 1], [], []>} : vector<64x96xbf16>, vector<96x32xbf16>, vector<64x32xf32> -> vector<64x32xf32>
    %17 = vector.extract_strided_slice %2 {offsets = [0, 0], sizes = [1, 32], strides = [1, 1]} : vector<16x32xf32> to vector<1x32xf32>
    %18 = vector.broadcast %17 : vector<1x32xf32> to vector<64x32xf32>
    %19 = arith.addf %16, %18 : vector<64x32xf32>
    %cst_13 = arith.constant 0.000000e+00 : f32
    %20 = vector.broadcast %cst_13 : f32 to vector<64x32xf32>
    %21 = arith.cmpf ogt, %19, %20 : vector<64x32xf32>
    %cst_14 = arith.constant 0.00999999977 : f32
    %22 = vector.broadcast %cst_14 : f32 to vector<64x32xf32>
    %23 = arith.mulf %22, %19 : vector<64x32xf32>
    %24 = arith.select %21, %19, %23 : vector<64x32xi1>, vector<64x32xf32>
    %cst_15 = arith.constant dense<0.000000e+00> : vector<32xf32>
    %25 = vector.multi_reduction <add>, %24, %cst_15 [0] : vector<64x32xf32> to vector<32xf32>
    %26 = vector.shape_cast %25 : vector<32xf32> to vector<1x32xf32>
    %cst_16 = arith.constant 6.400000e+01 : f32
    %27 = vector.broadcast %cst_16 : f32 to vector<1x32xf32>
    %28 = arith.divf %26, %27 : vector<1x32xf32>
    %29 = arith.mulf %24, %24 : vector<64x32xf32>
    %cst_17 = arith.constant dense<0.000000e+00> : vector<32xf32>
    %30 = vector.multi_reduction <add>, %29, %cst_17 [0] : vector<64x32xf32> to vector<32xf32>
    %31 = vector.shape_cast %30 : vector<32xf32> to vector<1x32xf32>
    %cst_18 = arith.constant 6.400000e+01 : f32
    %32 = vector.broadcast %cst_18 : f32 to vector<1x32xf32>
    %33 = arith.divf %31, %32 : vector<1x32xf32>
    %34 = arith.mulf %28, %28 : vector<1x32xf32>
    %35 = arith.subf %33, %34 : vector<1x32xf32>
    %cst_19 = arith.constant 0.000000e+00 : f32
    %36 = vector.broadcast %cst_19 : f32 to vector<1x32xf32>
    %37 = arith.maximumf %35, %36 : vector<1x32xf32>
    %38 = vector.extract_strided_slice %2 {offsets = [4, 0], sizes = [1, 32], strides = [1, 1]} : vector<16x32xf32> to vector<1x32xf32>
    %39 = vector.extract_strided_slice %2 {offsets = [7, 0], sizes = [1, 32], strides = [1, 1]} : vector<16x32xf32> to vector<1x32xf32>
    %40 = vector.broadcast %28 : vector<1x32xf32> to vector<64x32xf32>
    %41 = arith.subf %24, %40 : vector<64x32xf32>
    %cst_20 = arith.constant 9.99999974E-6 : f32
    %42 = vector.broadcast %cst_20 : f32 to vector<1x32xf32>
    %43 = arith.addf %37, %42 : vector<1x32xf32>
    %44 = math.rsqrt %43 : vector<1x32xf32>
    %45 = vector.broadcast %44 : vector<1x32xf32> to vector<64x32xf32>
    %46 = arith.mulf %41, %45 : vector<64x32xf32>
    %47 = vector.broadcast %38 : vector<1x32xf32> to vector<64x32xf32>
    %48 = arith.mulf %46, %47 : vector<64x32xf32>
    %49 = vector.broadcast %39 : vector<1x32xf32> to vector<64x32xf32>
    %50 = arith.addf %48, %49 : vector<64x32xf32>
    %51 = arith.truncf %50 : vector<64x32xf32> to vector<64x32xbf16>
    %cst_21 = arith.constant dense<0.000000e+00> : vector<64x32xf32>
    %52 = tpu.matmul %1, %51, %cst_21 {dimension_numbers = #tpu.dot_dimension_numbers<[1], [0], [0], [1], [0, 0, 1, 1], [], []>} : vector<64x64xbf16>, vector<64x32xbf16>, vector<64x32xf32> -> vector<64x32xf32>
    %53 = arith.truncf %52 : vector<64x32xf32> to vector<64x32xbf16>
    %cst_22 = arith.constant dense<0.000000e+00> : vector<64x32xf32>
    %54 = tpu.matmul %1, %53, %cst_22 {dimension_numbers = #tpu.dot_dimension_numbers<[1], [0], [0], [1], [0, 0, 1, 1], [], []>} : vector<64x64xbf16>, vector<64x32xbf16>, vector<64x32xf32> -> vector<64x32xf32>
    %cst_23 = arith.constant 2.000000e+00 : f32
    %55 = vector.broadcast %cst_23 : f32 to vector<64x32xf32>
    %56 = arith.mulf %55, %54 : vector<64x32xf32>
    %57 = arith.subf %56, %50 : vector<64x32xf32>
    %58 = tpu.concatenate %50, %52, %57 in 1 : vector<64x32xf32>, vector<64x32xf32>, vector<64x32xf32> -> vector<64x96xf32>
    %59 = arith.truncf %58 : vector<64x96xf32> to vector<64x96xbf16>
    %c1 = arith.constant 1 : index
    %c0_24 = arith.constant 0 : index
    %c0_25 = arith.constant 0 : index
    %60 = vector.load %arg3[%c1, %c0_24, %c0_25] : memref<4x96x32xbf16, #tpu.memory_space<vmem>>, vector<1x96x32xbf16>
    %61 = vector.shape_cast %60 : vector<1x96x32xbf16> to vector<96x32xbf16>
    %cst_26 = arith.constant dense<0.000000e+00> : vector<64x32xf32>
    %62 = tpu.matmul %59, %61, %cst_26 {dimension_numbers = #tpu.dot_dimension_numbers<[1], [0], [0], [1], [0, 0, 1, 1], [], []>} : vector<64x96xbf16>, vector<96x32xbf16>, vector<64x32xf32> -> vector<64x32xf32>
    %63 = vector.extract_strided_slice %2 {offsets = [1, 0], sizes = [1, 32], strides = [1, 1]} : vector<16x32xf32> to vector<1x32xf32>
    %64 = vector.broadcast %63 : vector<1x32xf32> to vector<64x32xf32>
    %65 = arith.addf %62, %64 : vector<64x32xf32>
    %cst_27 = arith.constant 0.000000e+00 : f32
    %66 = vector.broadcast %cst_27 : f32 to vector<64x32xf32>
    %67 = arith.cmpf ogt, %65, %66 : vector<64x32xf32>
    %cst_28 = arith.constant 0.00999999977 : f32
    %68 = vector.broadcast %cst_28 : f32 to vector<64x32xf32>
    %69 = arith.mulf %68, %65 : vector<64x32xf32>
    %70 = arith.select %67, %65, %69 : vector<64x32xi1>, vector<64x32xf32>
    %cst_29 = arith.constant dense<0.000000e+00> : vector<32xf32>
    %71 = vector.multi_reduction <add>, %70, %cst_29 [0] : vector<64x32xf32> to vector<32xf32>
    %72 = vector.shape_cast %71 : vector<32xf32> to vector<1x32xf32>
    %cst_30 = arith.constant 6.400000e+01 : f32
    %73 = vector.broadcast %cst_30 : f32 to vector<1x32xf32>
    %74 = arith.divf %72, %73 : vector<1x32xf32>
    %75 = arith.mulf %70, %70 : vector<64x32xf32>
    %cst_31 = arith.constant dense<0.000000e+00> : vector<32xf32>
    %76 = vector.multi_reduction <add>, %75, %cst_31 [0] : vector<64x32xf32> to vector<32xf32>
    %77 = vector.shape_cast %76 : vector<32xf32> to vector<1x32xf32>
    %cst_32 = arith.constant 6.400000e+01 : f32
    %78 = vector.broadcast %cst_32 : f32 to vector<1x32xf32>
    %79 = arith.divf %77, %78 : vector<1x32xf32>
    %80 = arith.mulf %74, %74 : vector<1x32xf32>
    %81 = arith.subf %79, %80 : vector<1x32xf32>
    %cst_33 = arith.constant 0.000000e+00 : f32
    %82 = vector.broadcast %cst_33 : f32 to vector<1x32xf32>
    %83 = arith.maximumf %81, %82 : vector<1x32xf32>
    %84 = vector.extract_strided_slice %2 {offsets = [5, 0], sizes = [1, 32], strides = [1, 1]} : vector<16x32xf32> to vector<1x32xf32>
    %85 = vector.extract_strided_slice %2 {offsets = [8, 0], sizes = [1, 32], strides = [1, 1]} : vector<16x32xf32> to vector<1x32xf32>
    %86 = vector.broadcast %74 : vector<1x32xf32> to vector<64x32xf32>
    %87 = arith.subf %70, %86 : vector<64x32xf32>
    %cst_34 = arith.constant 9.99999974E-6 : f32
    %88 = vector.broadcast %cst_34 : f32 to vector<1x32xf32>
    %89 = arith.addf %83, %88 : vector<1x32xf32>
    %90 = math.rsqrt %89 : vector<1x32xf32>
    %91 = vector.broadcast %90 : vector<1x32xf32> to vector<64x32xf32>
    %92 = arith.mulf %87, %91 : vector<64x32xf32>
    %93 = vector.broadcast %84 : vector<1x32xf32> to vector<64x32xf32>
    %94 = arith.mulf %92, %93 : vector<64x32xf32>
    %95 = vector.broadcast %85 : vector<1x32xf32> to vector<64x32xf32>
    %96 = arith.addf %94, %95 : vector<64x32xf32>
    %97 = arith.truncf %96 : vector<64x32xf32> to vector<64x32xbf16>
    %cst_35 = arith.constant dense<0.000000e+00> : vector<64x32xf32>
    %98 = tpu.matmul %1, %97, %cst_35 {dimension_numbers = #tpu.dot_dimension_numbers<[1], [0], [0], [1], [0, 0, 1, 1], [], []>} : vector<64x64xbf16>, vector<64x32xbf16>, vector<64x32xf32> -> vector<64x32xf32>
    %99 = arith.truncf %98 : vector<64x32xf32> to vector<64x32xbf16>
    %cst_36 = arith.constant dense<0.000000e+00> : vector<64x32xf32>
    %100 = tpu.matmul %1, %99, %cst_36 {dimension_numbers = #tpu.dot_dimension_numbers<[1], [0], [0], [1], [0, 0, 1, 1], [], []>} : vector<64x64xbf16>, vector<64x32xbf16>, vector<64x32xf32> -> vector<64x32xf32>
    %cst_37 = arith.constant 2.000000e+00 : f32
    %101 = vector.broadcast %cst_37 : f32 to vector<64x32xf32>
    %102 = arith.mulf %101, %100 : vector<64x32xf32>
    %103 = arith.subf %102, %96 : vector<64x32xf32>
    %104 = tpu.concatenate %96, %98, %103 in 1 : vector<64x32xf32>, vector<64x32xf32>, vector<64x32xf32> -> vector<64x96xf32>
    %105 = arith.truncf %104 : vector<64x96xf32> to vector<64x96xbf16>
    %c2 = arith.constant 2 : index
    %c0_38 = arith.constant 0 : index
    %c0_39 = arith.constant 0 : index
    %106 = vector.load %arg3[%c2, %c0_38, %c0_39] : memref<4x96x32xbf16, #tpu.memory_space<vmem>>, vector<1x96x32xbf16>
    %107 = vector.shape_cast %106 : vector<1x96x32xbf16> to vector<96x32xbf16>
    %cst_40 = arith.constant dense<0.000000e+00> : vector<64x32xf32>
    %108 = tpu.matmul %105, %107, %cst_40 {dimension_numbers = #tpu.dot_dimension_numbers<[1], [0], [0], [1], [0, 0, 1, 1], [], []>} : vector<64x96xbf16>, vector<96x32xbf16>, vector<64x32xf32> -> vector<64x32xf32>
    %109 = vector.extract_strided_slice %2 {offsets = [2, 0], sizes = [1, 32], strides = [1, 1]} : vector<16x32xf32> to vector<1x32xf32>
    %110 = vector.broadcast %109 : vector<1x32xf32> to vector<64x32xf32>
    %111 = arith.addf %108, %110 : vector<64x32xf32>
    %cst_41 = arith.constant 0.000000e+00 : f32
    %112 = vector.broadcast %cst_41 : f32 to vector<64x32xf32>
    %113 = arith.maximumf %111, %112 : vector<64x32xf32>
    %cst_42 = arith.constant dense<0.000000e+00> : vector<32xf32>
    %114 = vector.multi_reduction <add>, %113, %cst_42 [0] : vector<64x32xf32> to vector<32xf32>
    %115 = vector.shape_cast %114 : vector<32xf32> to vector<1x32xf32>
    %cst_43 = arith.constant 6.400000e+01 : f32
    %116 = vector.broadcast %cst_43 : f32 to vector<1x32xf32>
    %117 = arith.divf %115, %116 : vector<1x32xf32>
    %118 = arith.mulf %113, %113 : vector<64x32xf32>
    %cst_44 = arith.constant dense<0.000000e+00> : vector<32xf32>
    %119 = vector.multi_reduction <add>, %118, %cst_44 [0] : vector<64x32xf32> to vector<32xf32>
    %120 = vector.shape_cast %119 : vector<32xf32> to vector<1x32xf32>
    %cst_45 = arith.constant 6.400000e+01 : f32
    %121 = vector.broadcast %cst_45 : f32 to vector<1x32xf32>
    %122 = arith.divf %120, %121 : vector<1x32xf32>
    %123 = arith.mulf %117, %117 : vector<1x32xf32>
    %124 = arith.subf %122, %123 : vector<1x32xf32>
    %cst_46 = arith.constant 0.000000e+00 : f32
    %125 = vector.broadcast %cst_46 : f32 to vector<1x32xf32>
    %126 = arith.maximumf %124, %125 : vector<1x32xf32>
    %127 = vector.extract_strided_slice %2 {offsets = [6, 0], sizes = [1, 32], strides = [1, 1]} : vector<16x32xf32> to vector<1x32xf32>
    %128 = vector.extract_strided_slice %2 {offsets = [9, 0], sizes = [1, 32], strides = [1, 1]} : vector<16x32xf32> to vector<1x32xf32>
    %129 = vector.broadcast %117 : vector<1x32xf32> to vector<64x32xf32>
    %130 = arith.subf %113, %129 : vector<64x32xf32>
    %cst_47 = arith.constant 9.99999974E-6 : f32
    %131 = vector.broadcast %cst_47 : f32 to vector<1x32xf32>
    %132 = arith.addf %126, %131 : vector<1x32xf32>
    %133 = math.rsqrt %132 : vector<1x32xf32>
    %134 = vector.broadcast %133 : vector<1x32xf32> to vector<64x32xf32>
    %135 = arith.mulf %130, %134 : vector<64x32xf32>
    %136 = vector.broadcast %127 : vector<1x32xf32> to vector<64x32xf32>
    %137 = arith.mulf %135, %136 : vector<64x32xf32>
    %138 = vector.broadcast %128 : vector<1x32xf32> to vector<64x32xf32>
    %139 = arith.addf %137, %138 : vector<64x32xf32>
    %140 = arith.truncf %139 : vector<64x32xf32> to vector<64x32xbf16>
    %cst_48 = arith.constant dense<0.000000e+00> : vector<64x32xf32>
    %141 = tpu.matmul %1, %140, %cst_48 {dimension_numbers = #tpu.dot_dimension_numbers<[1], [0], [0], [1], [0, 0, 1, 1], [], []>} : vector<64x64xbf16>, vector<64x32xbf16>, vector<64x32xf32> -> vector<64x32xf32>
    %142 = arith.truncf %141 : vector<64x32xf32> to vector<64x32xbf16>
    %cst_49 = arith.constant dense<0.000000e+00> : vector<64x32xf32>
    %143 = tpu.matmul %1, %142, %cst_49 {dimension_numbers = #tpu.dot_dimension_numbers<[1], [0], [0], [1], [0, 0, 1, 1], [], []>} : vector<64x64xbf16>, vector<64x32xbf16>, vector<64x32xf32> -> vector<64x32xf32>
    %cst_50 = arith.constant 2.000000e+00 : f32
    %144 = vector.broadcast %cst_50 : f32 to vector<64x32xf32>
    %145 = arith.mulf %144, %143 : vector<64x32xf32>
    %146 = arith.subf %145, %139 : vector<64x32xf32>
    %147 = tpu.concatenate %139, %141, %146 in 1 : vector<64x32xf32>, vector<64x32xf32>, vector<64x32xf32> -> vector<64x96xf32>
    %148 = arith.truncf %147 : vector<64x96xf32> to vector<64x96xbf16>
    %c3 = arith.constant 3 : index
    %c0_51 = arith.constant 0 : index
    %c0_52 = arith.constant 0 : index
    %149 = vector.load %arg3[%c3, %c0_51, %c0_52] : memref<4x96x32xbf16, #tpu.memory_space<vmem>>, vector<1x96x32xbf16>
    %150 = vector.shape_cast %149 : vector<1x96x32xbf16> to vector<96x32xbf16>
    %cst_53 = arith.constant dense<0.000000e+00> : vector<64x32xf32>
    %151 = tpu.matmul %148, %150, %cst_53 {dimension_numbers = #tpu.dot_dimension_numbers<[1], [0], [0], [1], [0, 0, 1, 1], [], []>} : vector<64x96xbf16>, vector<96x32xbf16>, vector<64x32xf32> -> vector<64x32xf32>
    %152 = vector.extract_strided_slice %2 {offsets = [3, 0], sizes = [1, 32], strides = [1, 1]} : vector<16x32xf32> to vector<1x32xf32>
    %153 = vector.broadcast %152 : vector<1x32xf32> to vector<64x32xf32>
    %154 = arith.addf %151, %153 : vector<64x32xf32>
    %155 = arith.mulf %154, %154 : vector<64x32xf32>
    %cst_54 = arith.constant dense<0.000000e+00> : vector<64xf32>
    %156 = vector.multi_reduction <add>, %155, %cst_54 [1] : vector<64x32xf32> to vector<64xf32>
    %157 = vector.shape_cast %156 : vector<64xf32> to vector<64x1xf32>
    %cst_55 = arith.constant 1.000000e-24 : f32
    %158 = vector.broadcast %cst_55 : f32 to vector<64x1xf32>
    %159 = arith.maximumf %157, %158 : vector<64x1xf32>
    %160 = math.rsqrt %159 : vector<64x1xf32>
    %161 = vector.broadcast %160 : vector<64x1xf32> to vector<64x32xf32>
    %162 = arith.mulf %154, %161 : vector<64x32xf32>
    %c0_56 = arith.constant 0 : index
    %c0_57 = arith.constant 0 : index
    %163 = vector.load %arg5[%c0_56, %c0_57] : memref<32x32xf32, #tpu.memory_space<vmem>>, vector<32x32xf32>
    %cst_58 = arith.constant dense<0.000000e+00> : vector<64x32xf32>
    %164 = tpu.matmul %162, %163, %cst_58 {dimension_numbers = #tpu.dot_dimension_numbers<[1], [0], [0], [1], [0, 0, 1, 1], [], []>} : vector<64x32xf32>, vector<32x32xf32>, vector<64x32xf32> -> vector<64x32xf32>
    %165 = vector.extract_strided_slice %2 {offsets = [10, 0], sizes = [1, 32], strides = [1, 1]} : vector<16x32xf32> to vector<1x32xf32>
    %166 = vector.broadcast %165 : vector<1x32xf32> to vector<64x32xf32>
    %167 = arith.addf %164, %166 : vector<64x32xf32>
    %c0_59 = arith.constant 0 : index
    %c0_60 = arith.constant 0 : index
    %c0_61 = arith.constant 0 : index
    %168 = vector.load %arg6[%c0_59, %c0_60, %c0_61] : memref<1x64x32xf32, #tpu.memory_space<vmem>>, vector<1x64x32xf32>
    %169 = vector.shape_cast %168 : vector<1x64x32xf32> to vector<64x32xf32>
    %170 = vector.shape_cast %167 : vector<64x32xf32> to vector<1x64x32xf32>
    tpu.vector_store %arg6[%c0_59, %c0_60, %c0_61], %170 {strides = array<i32>} : memref<1x64x32xf32, #tpu.memory_space<vmem>>, vector<1x64x32xf32>,
    return
  }
  func.func @transform_0(%arg0: i32) -> (i32, i32, i32) {
    %c0_i32 = arith.constant 0 : i32
    %c0_i32_0 = arith.constant 0 : i32
    %c0_i32_1 = arith.constant 0 : i32
    return %arg0, %c0_i32, %c0_i32_0 : i32, i32, i32
  }
  func.func @transform_1(%arg0: i32) -> (i32, i32, i32) {
    %c0_i32 = arith.constant 0 : i32
    %c0_i32_0 = arith.constant 0 : i32
    %c0_i32_1 = arith.constant 0 : i32
    return %arg0, %c0_i32, %c0_i32_0 : i32, i32, i32
  }
  func.func @transform_2(%arg0: i32) -> (i32, i32, i32) {
    %c0_i32 = arith.constant 0 : i32
    %c0_i32_0 = arith.constant 0 : i32
    %c0_i32_1 = arith.constant 0 : i32
    %c0_i32_2 = arith.constant 0 : i32
    return %c0_i32, %c0_i32_0, %c0_i32_1 : i32, i32, i32
  }
  func.func @transform_3(%arg0: i32) -> (i32, i32) {
    %c0_i32 = arith.constant 0 : i32
    %c0_i32_0 = arith.constant 0 : i32
    %c0_i32_1 = arith.constant 0 : i32
    return %c0_i32, %c0_i32_0 : i32, i32
  }
  func.func @transform_4(%arg0: i32) -> (i32, i32) {
    %c0_i32 = arith.constant 0 : i32
    %c0_i32_0 = arith.constant 0 : i32
    %c0_i32_1 = arith.constant 0 : i32
    return %c0_i32, %c0_i32_0 : i32, i32
  }
  func.func @transform_5(%arg0: i32) -> (i32, i32, i32) {
    %c0_i32 = arith.constant 0 : i32
    %c0_i32_0 = arith.constant 0 : i32
    %c0_i32_1 = arith.constant 0 : i32
    return %arg0, %c0_i32, %c0_i32_0 : i32, i32, i32
  }
}

</mosaic_0001>

<bundles_post_ra>
// kernel: tpu_custom_call.1
= control target key start
LH: loop header
LB: loop body
LE: loop exit
PB: predicated region body
PF: predicated region fallthrough
CT: control target
= control target key end

     0   :  { %s2464_s18 = smov 0   ;;  %s3212_s0 = inlined_call_operand.vmem [shape: bf16[2,64,64], index: 0, kind: input, shape index: {}]   ;;  %s3213_s1 = inlined_call_operand.vmem [shape: f32[2,64,32], index: 1, kind: input, shape index: {}]   ;;  %s3214_s2 = inlined_call_operand.vmem [shape: bf16[4,96,32], index: 2, kind: input, shape index: {}]   ;;  %s3215_s3 = inlined_call_operand.vmem [shape: f32[16,32], index: 3, kind: input, shape index: {}]   ;;  %s3216_s4 = inlined_call_operand.vmem [shape: f32[32,32], index: 4, kind: input, shape index: {}]   ;;  %s3217_s5 = inlined_call_operand.vmem [shape: f32[2,64,32], index: 5, kind: output, shape index: {}]  }
   0x1 LB: > { %s1962_s19 = sadd.s32 4294967295, %s2429_s18   ;;  %p1966_p0 = scmp.ge.s32.totalorder %s2429_s18, 1  ;;  %s2429_s18 = sphi %s2464_s18, %s15_s18  }
   0x2   : > { %p197_p1 = scmp.lt.s32.totalorder %s2429_s18, 3 }
   0x4   : > { %p198_p2 = pnand %p1966_p0, %p197_p1 }
   0x5   : > { %p230_p3 = scmp.lt.s32.totalorder (!%p198_p2), %s1962_s19, 1  ;;  %s2431_s28 = smov (!%p198_p2), 32  }
   0x6   : > { %201 = sbr.rel (%p198_p2) target bundleno = 3074 (0xc02), region = 40  ;;  %s2432_s29 = smov (!%p198_p2), 64  }
   0xb   : > { %s3219_s19 = smov (!%p230_p3, %s1962_s19), 1  ;;  %vm288_vm0 = vcmask 523264   ;;  %v2191_v46 = vld [vmem:[%s3214_s2 + $0x28] sm:$0xff]  ;;  %v2190_v48 = vld [vmem:[%s3214_s2 + $0x20] sm:$0xff]  ;;  %v2189_v49 = vld [vmem:[%s3214_s2 + $0x18] sm:$0xff]  ;;  %vm443_vm1 = vcmask 261120  }
   0xc   : > { %s2180_s20 = sshll.u32 %s3219_s19, 6  ;;  %s2179_s24 = sshll.u32 %s3219_s19, 5  ;;  %v2188_v53 = vld [vmem:[%s3214_s2 + $0x10] sm:$0xff]  ;;  %v2187_v57 = vld [vmem:[%s3214_s2 + $0x8] sm:$0xff]  ;;  %vm513_vm2 = vcmask 785408  }
   0xd   : > { %s239_s23 = scalar_lea.vmem %s3213_s1, %s2180_s20  ;;  %s2506_s27 = scalar_lea.vmem %s3212_s0, %s2179_s24 }
   0xe   : > { %v2480_v0 = vld [vmem:[%s239_s23 + $0x30] sm:$0xff]  ;;  %v2482_v1 = vld [vmem:[%s239_s23 + $0x38] sm:$0xff]  ;;  %v2484_v2 = vld [vmem:[%s239_s23 + $0x20] sm:$0xff]  ;;  %s244_s10 = scalar_lea.vmem %s3217_s5, %s2180_s20 }
   0xf   : > { %v267_v3 = vpack.c.bf16 %v2482_v1, %v2480_v0  ;;  %v2488_v4 = vld [vmem:[%s239_s23 + $0x28] sm:$0xff]  ;;  %v2492_v6 = vld [vmem:[%s239_s23 + $0x10] sm:$0xff]  ;;  %v2494_v7 = vld [vmem:[%s239_s23 + $0x18] sm:$0xff] }
  0x10   : > { %v266_v5 = vpack.c.bf16 %v2488_v4, %v2484_v2  ;;  %v265_v8 = vpack.c.bf16 %v2494_v7, %v2492_v6  ;;  %v2499_v9 = vld [vmem:[%s239_s23] sm:$0xff]  ;;  %v2501_v10 = vld [vmem:[%s239_s23 + $0x8] sm:$0xff]  ;;  %v2511_v12 = vld [vmem:[%s2506_s27 + $0x10] sm:$0xff] }
  0x11   : > { %2211 = vmatpush.bf16.msra.mxu2 %v267_v3  ;;  %2212 = vmatpush.bf16.msra.mxu3 %v267_v3  ;;  %v264_v11 = vpack.c.bf16 %v2501_v10, %v2499_v9  ;;  %v2514_v13 = vld [vmem:[%s2506_s27 + $0x18] sm:$0xff]  ;;  %v2517_v14 = vld [vmem:[%s2506_s27 + $0x8] sm:$0xff]  ;;  %v2520_v15 = vld [vmem:[%s2506_s27] sm:$0xff] }
  0x12   : > { %2210 = vmatpush.bf16.msra.mxu1 %v267_v3  ;;  %305 = vmatpush.bf16.msra.mxu0 %v267_v3 }
  0x15   : > { %2214 = vmatpush.bf16.msra.mxu2 %v266_v5  ;;  %2215 = vmatpush.bf16.msra.mxu3 %v266_v5 }
  0x16   : > { %2213 = vmatpush.bf16.msra.mxu1 %v266_v5  ;;  %306 = vmatpush.bf16.msra.mxu0 %v266_v5  ;;  %v2186_v5 = vld [vmem:[%s3214_s2] sm:$0xff] }
  0x19   : > { %2217 = vmatpush.bf16.msra.mxu2 %v265_v8  ;;  %2218 = vmatpush.bf16.msra.mxu3 %v265_v8 }
  0x1a   : > { %2216 = vmatpush.bf16.msra.mxu1 %v265_v8  ;;  %307 = vmatpush.bf16.msra.mxu0 %v265_v8 }
  0x1d   : > { %2220 = vmatpush.bf16.msra.mxu2 %v264_v11  ;;  %2221 = vmatpush.bf16.msra.mxu3 %v264_v11 }
  0x1e   : > { %2219 = vmatpush.bf16.msra.mxu1 %v264_v11  ;;  %308 = vmatpush.bf16.msra.mxu0 %v264_v11 }
  0x20   : > { %1991 = vmatmul.msk.bf16.vlgmr.msra.gmra.mxu2 %vm288_vm0, %v2511_v12  ;;  %1992 = vmatmul.msk.bf16.vlgmr.msra.gmra.mxu3 %vm288_vm0, %v2514_v13 }
  0x21   : > { %1990 = vmatmul.msk.bf16.vlgmr.msra.gmra.mxu1 %vm288_vm0, %v2517_v14  ;;  %1989 = vmatmul.msk.bf16.vlgmr.msra.gmra.mxu0 %vm288_vm0, %v2520_v15 }
  0x22   : > { %528 = vmatpush.bf16.msrb.mxu2 %v2191_v46 }
  0x26   : > { %529 = vmatpush.bf16.msrb.mxu2 %v2190_v48 }
  0x2a   : > { %530 = vmatpush.bf16.msrb.mxu2 %v2189_v49 }
  0x2e   : > { %531 = vmatpush.bf16.msrb.mxu2 %v2188_v53 }
  0x32   : > { %532 = vmatpush.bf16.msrb.mxu2 %v2187_v57 }
  0x36   : > { %533 = vmatpush.bf16.msrb.mxu2 %v2186_v5 }
  0x9e   : > { %v315_v16 = vpop.f32.mrf.mxu1  ;;  %v310_v17 = vpop.f32.mrf.mxu0 }
  0xa3   : > { %v320_v18 = vpop.f32.mrf.mxu2  ;;  %v325_v19 = vpop.f32.mrf.mxu3 }
  0xa6   : > { %v317_v20 = vpop.f32.mrf.mxu1  ;;  %v312_v21 = vpop.f32.mrf.mxu0 }
  0xa7   : > { %v2243_v22 = vpack.i.bf16 %v317_v20, %v315_v16  ;;  %v2233_v23 = vpack.i.bf16 %v312_v21, %v310_v17  ;;  %v331_v29 = vpack.c.bf16 %v317_v20, %v315_v16  ;;  %v330_v30 = vpack.c.bf16 %v312_v21, %v310_v17 }
  0xa9   : > { %2244 = vrot.lane.b32.xlu1 %v2243_v22, %s2431_s28  ;;  %2234 = vrot.lane.b32.xlu0 %v2233_v23, %s2431_s28 }
  0xab   : > { %v322_v24 = vpop.f32.mrf.mxu2  ;;  %v327_v25 = vpop.f32.mrf.mxu3 }
  0xac   : > { %v333_v26 = vpack.c.bf16 %v327_v25, %v325_v19  ;;  %v2253_v27 = vpack.i.bf16 %v322_v24, %v320_v18  ;;  %v332_v28 = vpack.c.bf16 %v322_v24, %v320_v18  ;;  %v2263_v39 = vpack.i.bf16 %v327_v25, %v325_v19 }
  0xae   : > { %338 = vmatpush.bf16.msrb.mxu1 %v333_v26  ;;  %2254 = vrot.lane.b32.xlu2 %v2253_v27, %s2431_s28 }
  0xb2   : > { %339 = vmatpush.bf16.msrb.mxu1 %v332_v28 }
  0xb6   : > { %340 = vmatpush.bf16.msrb.mxu1 %v331_v29 }
  0xba   : > { %341 = vmatpush.bf16.msrb.mxu1 %v330_v30 }
  0xbd   : > { %1993 = vmatmul.msk.bf16.vlgmr.msrb.gmra.mxu1 %vm288_vm0, %v2520_v15 }
  0xcd   : > { %1994 = vmatmul.msk.bf16.gmra.mxu1 %vm288_vm0, %v2517_v14 }
  0xdd   : > { %1995 = vmatmul.msk.bf16.gmra.mxu1 %vm288_vm0, %v2511_v12 }
  0xed   : > { %1996 = vmatmul.msk.bf16.gmra.mxu1 %vm288_vm0, %v2514_v13 }
 0x11b   : > { %v2235_v8 = vpop.permute.xlu0 %2234  ;;  %v2245_v25 = vpop.permute.xlu1 %2244 }
 0x11c   : > { %v2237_v11 = vunpack.i.h.bf16 %v2235_v8  ;;  %v2236_v16 = vunpack.i.l.bf16 %v2235_v8  ;;  %v2247_v26 = vunpack.i.h.bf16 %v2245_v25  ;;  %v2246_v27 = vunpack.i.l.bf16 %v2245_v25 }
 0x11e   : > { %v445_v20 = vsel %vm443_vm1, %v2501_v10, %v2237_v11  ;;  %v444_v21 = vsel %vm443_vm1, %v2499_v9, %v2236_v16 }
 0x13a   : > { %v343_v31 = vpop.f32.mrf.mxu1 }
 0x13b   : > { %v363_v32 = vmul.f32 2.0, %v343_v31  ;;  %v2255_v31 = vpop.permute.xlu2 %2254 }
 0x13d   : > { %v371_v35 = vsub.f32 %v363_v32, %v2499_v9  ;;  %v446_v9 = vsel %vm443_vm1, %v2492_v6, %v2246_v27 }
 0x142   : > { %v345_v33 = vpop.f32.mrf.mxu1 }
 0x143   : > { %v364_v34 = vmul.f32 2.0, %v345_v33 }
 0x145   : > { %v372_v36 = vsub.f32 %v364_v34, %v2501_v10  ;;  %v447_v10 = vsel %vm443_vm1, %v2494_v7, %v2247_v26 }
 0x147   : > { %v2238_v37 = vpack.i.bf16 %v372_v36, %v371_v35  ;;  %v2257_v36 = vunpack.i.h.bf16 %v2255_v31 }
 0x149   : > { %2239 = vrot.lane.b32.xlu0 %v2238_v37, %s2432_s29  ;;  %v2256_v37 = vunpack.i.l.bf16 %v2255_v31 }
 0x14a   : > { %v348_v38 = vpop.f32.mrf.mxu1 }
 0x14b   : > { %v365_v40 = vmul.f32 2.0, %v348_v38 }
 0x14d   : > { %v373_v43 = vsub.f32 %v365_v40, %v2492_v6  ;;  %v449_v40 = vsel %vm443_vm1, %v2488_v4, %v2257_v36 }
 0x151   : > { %2264 = vrot.lane.b32.xlu0 %v2263_v39, %s2431_s28 }
 0x152   : > { %v350_v41 = vpop.f32.mrf.mxu1 }
 0x153   : > { %v366_v42 = vmul.f32 2.0, %v350_v41 }
 0x155   : > { %v374_v44 = vsub.f32 %v366_v42, %v2494_v7  ;;  %v448_v7 = vsel %vm443_vm1, %v2484_v2, %v2256_v37 }
 0x157   : > { %v2248_v45 = vpack.i.bf16 %v374_v44, %v373_v43 }
 0x159   : > { %2249 = vrot.lane.b32.xlu1 %v2248_v45, %s2432_s29 }
 0x15a   : > { %v353_v47 = vpop.f32.mrf.mxu1 }
 0x15b   : > { %v367_v50 = vmul.f32 2.0, %v353_v47 }
 0x15d   : > { %v375_v54 = vsub.f32 %v367_v50, %v2484_v2 }
 0x162   : > { %v355_v51 = vpop.f32.mrf.mxu1 }
 0x163   : > { %v368_v52 = vmul.f32 2.0, %v355_v51 }
 0x165   : > { %v376_v55 = vsub.f32 %v368_v52, %v2488_v4 }
 0x167   : > { %v2258_v56 = vpack.i.bf16 %v376_v55, %v375_v54 }
 0x169   : > { %2259 = vrot.lane.b32.xlu2 %v2258_v56, %s2432_s29  ;;  %v2603_v56 = vld [vmem:[%s3215_s3] sm:$0xff] }
 0x16a   : > { %v358_v58 = vpop.f32.mrf.mxu1  ;;  %v476_v57 = vperm.slane %v2603_v56, 0 }
 0x16b   : > { %v369_v59 = vmul.f32 2.0, %v358_v58 }
 0x16d   : > { %v377_v62 = vsub.f32 %v369_v59, %v2480_v0 }
 0x172   : > { %v360_v60 = vpop.f32.mrf.mxu1 }
 0x173   : > { %v370_v61 = vmul.f32 2.0, %v360_v60 }
 0x175   : > { %v378_v63 = vsub.f32 %v370_v61, %v2482_v1 }
 0x177   : > { %v2268_v3 = vpack.i.bf16 %v378_v63, %v377_v62 }
 0x179   : > { %2269 = vrot.lane.b32.xlu1 %v2268_v3, %s2432_s29 }
 0x1bb   : > { %v2240_v17 = vpop.permute.xlu0 %2239 }
 0x1bc   : > { %v2242_v18 = vunpack.i.h.bf16 %v2240_v17  ;;  %v2241_v19 = vunpack.i.l.bf16 %v2240_v17 }
 0x1be   : > { %v453_v22 = vsel %vm288_vm0, %v445_v20, %v2242_v18  ;;  %v452_v23 = vsel %vm288_vm0, %v444_v21, %v2241_v19 }
 0x1bf   : > { %v460_v24 = vpack.c.bf16 %v453_v22, %v452_v23 }
 0x1c1   : > { %2021 = vmatmul.msk.bf16.vlgmr.msrb.gmra.mxu2 %vm513_vm2, %v460_v24 }
 0x1c3   : > { %v2260_v35 = vpop.permute.xlu2 %2259  ;;  %v2265_v43 = vpop.permute.xlu0 %2264 }
 0x1c4   : > { %v2262_v38 = vunpack.i.h.bf16 %v2260_v35  ;;  %v2261_v39 = vunpack.i.l.bf16 %v2260_v35  ;;  %v2267_v44 = vunpack.i.h.bf16 %v2265_v43  ;;  %v2266_v45 = vunpack.i.l.bf16 %v2265_v43 }
 0x1c6   : > { %v456_v6 = vsel %vm288_vm0, %v448_v7, %v2261_v39  ;;  %v457_v41 = vsel %vm288_vm0, %v449_v40, %v2262_v38  ;;  %v451_v49 = vsel %vm443_vm1, %v2482_v1, %v2267_v44  ;;  %v450_v4 = vsel %vm443_vm1, %v2480_v0, %v2266_v45 }
 0x1c7   : > { %v462_v42 = vpack.c.bf16 %v457_v41, %v456_v6 }
 0x1cb   : > { %v2250_v28 = vpop.permute.xlu1 %2249 }
 0x1cc   : > { %v2252_v29 = vunpack.i.h.bf16 %v2250_v28  ;;  %v2251_v30 = vunpack.i.l.bf16 %v2250_v28 }
 0x1ce   : > { %v454_v32 = vsel %vm288_vm0, %v446_v9, %v2251_v30  ;;  %v455_v33 = vsel %vm288_vm0, %v447_v10, %v2252_v29  ;;  %v2433_v29 = vmov 64.0  }
 0x1cf   : > { %v461_v34 = vpack.c.bf16 %v455_v33, %v454_v32  ;;  %2393 = vrcp.f32 %v2433_v29 }
 0x1d1   : > { %2022 = vmatmul.msk.bf16.gmra.mxu2 %vm513_vm2, %v461_v34 }
 0x1d5   : > { %v2394_v43 = vpop.eup %2393 }
 0x1d6   : > { %vm605_vm11 = vweird.f32 %v2394_v43 }
 0x1e1   : > { %2023 = vmatmul.msk.bf16.gmra.mxu2 %vm513_vm2, %v462_v42 }
 0x1eb   : > { %v2270_v46 = vpop.permute.xlu1 %2269 }
 0x1ec   : > { %v2272_v47 = vunpack.i.h.bf16 %v2270_v46  ;;  %v2271_v48 = vunpack.i.l.bf16 %v2270_v46 }
 0x1ee   : > { %v458_v2 = vsel %vm288_vm0, %v450_v4, %v2271_v48  ;;  %v459_v50 = vsel %vm288_vm0, %v451_v49, %v2272_v47 }
 0x1ef   : > { %v463_v51 = vpack.c.bf16 %v459_v50, %v458_v2 }
 0x1f1   : > { %2024 = vmatmul.msk.bf16.gmra.mxu2 %vm513_vm2, %v463_v51 }
 0x244   : > { %v535_v52 = vpop.f32.mrf.mxu2 }
 0x245   : > { %v536_v58 = vadd.f32 %v535_v52, %v476_v57 }
 0x247   : > { %v563_v63 = vmul.f32 0.01, %v536_v58  ;;  %vm555_vm4 = vcmp.gt.f32.partialorder %v536_v58, 0.0 }
 0x249   : > { %v2608_v17 = vsel %vm555_vm4, %v536_v58, %v563_v63 }
 0x24a   : > { %v608_v23 = vmul.f32 %v2608_v17, %v2608_v17  ;;  %v579_v30 = vsel %vm443_vm1, %v2608_v17, 0.0 }
 0x24c   : > { %v537_v53 = vpop.f32.mrf.mxu2  ;;  %v616_v35 = vsel %vm443_vm1, %v608_v23, 0.0 }
 0x24d   : > { %v538_v0 = vadd.f32 %v537_v53, %v476_v57  ;;  %v601_v53 = vmul.f32 64.0, %v2394_v43 }
 0x24f   : > { %v564_v60 = vmul.f32 0.01, %v538_v0  ;;  %vm556_vm3 = vcmp.gt.f32.partialorder %v538_v0, 0.0 }
 0x251   : > { %v2606_v8 = vsel %vm556_vm3, %v538_v0, %v564_v60 }
 0x252   : > { %v609_v20 = vmul.f32 %v2606_v8, %v2606_v8  ;;  %v580_v24 = vsel %vm443_vm1, %v2606_v8, 0.0 }
 0x253   : > { %v581_v32 = vadd.f32 %v580_v24, %v579_v30 }
 0x254   : > { %v540_v54 = vpop.f32.mrf.mxu2  ;;  %v617_v31 = vsel %vm443_vm1, %v609_v20, 0.0 }
 0x255   : > { %v541_v59 = vadd.f32 %v540_v54, %v476_v57  ;;  %v618_v39 = vadd.f32 %v617_v31, %v616_v35 }
 0x257   : > { %v565_v3 = vmul.f32 0.01, %v541_v59  ;;  %vm557_vm5 = vcmp.gt.f32.partialorder %v541_v59, 0.0 }
 0x259   : > { %v2610_v18 = vsel %vm557_vm5, %v541_v59, %v565_v3 }
 0x25a   : > { %v610_v25 = vmul.f32 %v2610_v18, %v2610_v18  ;;  %v582_v10 = vsel %vm443_vm1, %v2610_v18, 0.0 }
 0x25b   : > { %v583_v40 = vadd.f32 %v582_v10, %v581_v32 }
 0x25c   : > { %v542_v55 = vpop.f32.mrf.mxu2  ;;  %v619_v36 = vsel %vm443_vm1, %v610_v25, 0.0 }
 0x25d   : > { %v543_v61 = vadd.f32 %v542_v55, %v476_v57  ;;  %v620_v44 = vadd.f32 %v619_v36, %v618_v39 }
 0x25f   : > { %v566_v11 = vmul.f32 0.01, %v543_v61  ;;  %vm558_vm6 = vcmp.gt.f32.partialorder %v543_v61, 0.0 }
 0x261   : > { %v2614_v21 = vsel %vm558_vm6, %v543_v61, %v566_v11 }
 0x262   : > { %v611_v9 = vmul.f32 %v2614_v21, %v2614_v21  ;;  %v584_v37 = vsel %vm443_vm1, %v2614_v21, 0.0 }
 0x263   : > { %v585_v45 = vadd.f32 %v584_v37, %v583_v40 }
 0x264   : > { %v545_v1 = vpop.f32.mrf.mxu2  ;;  %v621_v6 = vsel %vm443_vm1, %v611_v9, 0.0 }
 0x265   : > { %v546_v5 = vadd.f32 %v545_v1, %v476_v57  ;;  %v622_v4 = vadd.f32 %v621_v6, %v620_v44 }
 0x267   : > { %v567_v19 = vmul.f32 0.01, %v546_v5  ;;  %vm559_vm7 = vcmp.gt.f32.partialorder %v546_v5, 0.0 }
 0x269   : > { %v2622_v27 = vsel %vm559_vm7, %v546_v5, %v567_v19 }
 0x26a   : > { %v612_v38 = vmul.f32 %v2622_v27, %v2622_v27  ;;  %v586_v41 = vsel %vm443_vm1, %v2622_v27, 0.0 }
 0x26b   : > { %v587_v2 = vadd.f32 %v586_v41, %v585_v45  ;;  %v668_v45 = vperm.slane %v2603_v56, 4 }
 0x26c   : > { %v547_v62 = vpop.f32.mrf.mxu2  ;;  %v623_v46 = vsel %vm443_vm1, %v612_v38, 0.0 }
 0x26d   : > { %v548_v16 = vadd.f32 %v547_v62, %v476_v57  ;;  %v624_v54 = vadd.f32 %v623_v46, %v622_v4  ;;  %v602_v62 = vsub.f32 1.0, %v601_v53 }
 0x26f   : > { %v568_v22 = vmul.f32 0.01, %v548_v16  ;;  %vm560_vm8 = vcmp.gt.f32.partialorder %v548_v16, 0.0  ;;  %v603_v19 = vmul.f32 %v2394_v43, %v602_v62 }
 0x271   : > { %v2631_v33 = vsel %vm560_vm8, %v548_v16, %v568_v22  ;;  %v604_v25 = vadd.f32 %v2394_v43, %v603_v19 }
 0x272   : > { %v613_v42 = vmul.f32 %v2631_v33, %v2631_v33  ;;  %v588_v47 = vsel %vm443_vm1, %v2631_v33, 0.0 }
 0x273   : > { %v589_v55 = vadd.f32 %v588_v47, %v587_v2  ;;  %v2657_v31 = vsel %vm605_vm11, %v2394_v43, %v604_v25  ;;  %v677_v2 = vperm.slane %v2603_v56, 7 }
 0x274   : > { %v550_v26 = vpop.f32.mrf.mxu2  ;;  %v625_v51 = vsel %vm443_vm1, %v613_v42, 0.0 }
 0x275   : > { %v551_v28 = vadd.f32 %v550_v26, %v476_v57  ;;  %v626_v58 = vadd.f32 %v625_v51, %v624_v54 }
 0x277   : > { %vm561_vm9 = vcmp.gt.f32.partialorder %v551_v28, 0.0  ;;  %v569_v34 = vmul.f32 0.01, %v551_v28 }
 0x279   : > { %v2639_v7 = vsel %vm561_vm9, %v551_v28, %v569_v34 }
 0x27a   : > { %v614_v48 = vmul.f32 %v2639_v7, %v2639_v7  ;;  %v590_v52 = vsel %vm443_vm1, %v2639_v7, 0.0 }
 0x27b   : > { %v591_v59 = vadd.f32 %v590_v52, %v589_v55 }
 0x27c   : > { %v552_v49 = vpop.f32.mrf.mxu2  ;;  %v627_v0 = vsel %vm443_vm1, %v614_v48, 0.0 }
 0x27d   : > { %v553_v50 = vadd.f32 %v552_v49, %v476_v57  ;;  %v628_v57 = vadd.f32 %v627_v0, %v626_v58 }
 0x27f   : > { %vm562_vm10 = vcmp.gt.f32.partialorder %v553_v50, 0.0  ;;  %v570_v1 = vmul.f32 0.01, %v553_v50 }
 0x281   : > { %v578_v60 = vsel %vm562_vm10, %v553_v50, %v570_v1 }
 0x282   : > { %v592_v61 = vsel %vm443_vm1, %v578_v60, 0.0  ;;  %v615_v63 = vmul.f32 %v578_v60, %v578_v60 }
 0x283   : > { %v593_v3 = vadd.f32 %v592_v61, %v591_v59 }
 0x284   : > { %v629_v5 = vsel %vm443_vm1, %v615_v63, 0.0 }
 0x285   : > { %v594_v11 = vrot.slane %v593_v3, 4  ;;  %v630_v16 = vadd.f32 %v629_v5, %v628_v57 }
 0x287   : > { %v595_v20 = vadd.f32 %v594_v11, %v593_v3  ;;  %v631_v22 = vrot.slane %v630_v16, 4 }
 0x289   : > { %v596_v23 = vrot.slane %v595_v20, 2  ;;  %v632_v24 = vadd.f32 %v631_v22, %v630_v16 }
 0x28b   : > { %v597_v26 = vadd.f32 %v596_v23, %v595_v20  ;;  %v633_v28 = vrot.slane %v632_v24, 2 }
 0x28d   : > { %v598_v29 = vrot.slane %v597_v26, 1  ;;  %v634_v30 = vadd.f32 %v633_v28, %v632_v24 }
 0x28f   : > { %v599_v10 = vadd.f32 %v598_v29, %v597_v26  ;;  %v635_v9 = vrot.slane %v634_v30, 1 }
 0x291   : > { %v607_v32 = vmul.f32 %v2657_v31, %v599_v10  ;;  %v636_v34 = vadd.f32 %v635_v9, %v634_v30 }
 0x293   : > { %v637_v35 = vmul.f32 %v636_v34, %v2657_v31  ;;  %v638_v36 = vmul.f32 %v607_v32, %v607_v32  ;;  %v648_v46 = vsub.f32 %v578_v60, %v607_v32  ;;  %v647_v47 = vsub.f32 %v2639_v7, %v607_v32 }
 0x294   : > { %v645_v48 = vsub.f32 %v2622_v27, %v607_v32  ;;  %v646_v49 = vsub.f32 %v2631_v33, %v607_v32  ;;  %v643_v50 = vsub.f32 %v2610_v18, %v607_v32  ;;  %v644_v51 = vsub.f32 %v2614_v21, %v607_v32 }
 0x295   : > { %v639_v37 = vsub.f32 %v637_v35, %v638_v36  ;;  %v641_v27 = vsub.f32 %v2608_v17, %v607_v32  ;;  %v642_v33 = vsub.f32 %v2606_v8, %v607_v32 }
 0x297   : > { %v640_v38 = vmax.f32 %v639_v37, 0.0 }
 0x299   : > { %v649_v39 = vadd.f32 1e-05, %v640_v38 }
 0x29b   : > { %2395 = vrsqrt.f32 %v649_v39  ;;  %vm656_vm13 = vweird.f32 %v649_v39 }
 0x2a1   : > { %v2396_v40 = vpop.eup %2395 }
 0x2a2   : > { %v651_v6 = vmul.f32 %v2396_v40, %v649_v39  ;;  %vm657_vm12 = vweird.f32 %v2396_v40 }
 0x2a3   : > { %vm658_vm14 = vmor %vm656_vm13, %vm657_vm12 }
 0x2a4   : > { %v652_v41 = vmul.f32 %v2396_v40, %v651_v6 }
 0x2a6   : > { %v653_v42 = vmul.f32 0.5, %v652_v41 }
 0x2a8   : > { %v654_v44 = vsub.f32 1.5, %v653_v42 }
 0x2aa   : > { %v655_v43 = vmul.f32 %v2396_v40, %v654_v44 }
 0x2ac   : > { %v659_v4 = vsel %vm658_vm14, %v2396_v40, %v655_v43 }
 0x2ad   : > { %v667_v52 = vmul.f32 %v659_v4, %v648_v46  ;;  %v666_v53 = vmul.f32 %v659_v4, %v647_v47  ;;  %v664_v54 = vmul.f32 %v659_v4, %v645_v48  ;;  %v665_v55 = vmul.f32 %v659_v4, %v646_v49 }
 0x2ae   : > { %v662_v1 = vmul.f32 %v659_v4, %v643_v50  ;;  %v663_v0 = vmul.f32 %v659_v4, %v644_v51  ;;  %v660_v21 = vmul.f32 %v659_v4, %v641_v27  ;;  %v661_v63 = vmul.f32 %v659_v4, %v642_v33  ;;  %v2196_v51 = vld [vmem:[%s3214_s2 + $0x50] sm:$0xff] }
 0x2af   : > { %v675_v58 = vmul.f32 %v668_v45, %v666_v53  ;;  %v676_v59 = vmul.f32 %v668_v45, %v667_v52  ;;  %v673_v7 = vmul.f32 %v668_v45, %v664_v54  ;;  %v674_v60 = vmul.f32 %v668_v45, %v665_v55  ;;  %v2195_v53 = vld [vmem:[%s3214_s2 + $0x48] sm:$0xff] }
 0x2b0   : > { %v671_v18 = vmul.f32 %v668_v45, %v662_v1  ;;  %v672_v11 = vmul.f32 %v668_v45, %v663_v0  ;;  %v669_v16 = vmul.f32 %v668_v45, %v660_v21  ;;  %v670_v20 = vmul.f32 %v668_v45, %v661_v63 }
 0x2b1   : > { %v2670_v61 = vadd.f32 %v677_v2, %v675_v58  ;;  %v2672_v62 = vadd.f32 %v677_v2, %v676_v59  ;;  %v2676_v3 = vadd.f32 %v677_v2, %v673_v7  ;;  %v2678_v5 = vadd.f32 %v677_v2, %v674_v60 }
 0x2b2   : > { %v2682_v17 = vadd.f32 %v677_v2, %v671_v18  ;;  %v2684_v19 = vadd.f32 %v677_v2, %v672_v11  ;;  %v2688_v23 = vadd.f32 %v677_v2, %v669_v16  ;;  %v2690_v24 = vadd.f32 %v677_v2, %v670_v20  ;;  %v2197_v2 = vld [vmem:[%s3214_s2 + $0x58] sm:$0xff]  ;;  %v2192_v16 = vld [vmem:[%s3214_s2 + $0x30] sm:$0xff] }
 0x2b3   : > { %v689_v57 = vpack.c.bf16 %v2672_v62, %v2670_v61  ;;  %v688_v8 = vpack.c.bf16 %v2678_v5, %v2676_v3  ;;  %916 = vmatpush.bf16.msra.mxu1 %v2197_v2  ;;  %v2193_v11 = vld [vmem:[%s3214_s2 + $0x38] sm:$0xff] }
 0x2b4   : > { %v687_v22 = vpack.c.bf16 %v2684_v19, %v2682_v17  ;;  %v686_v25 = vpack.c.bf16 %v2690_v24, %v2688_v23 }
 0x2b5   : > { %694 = vmatpush.bf16.msrb.mxu3 %v689_v57  ;;  %v2194_v57 = vld [vmem:[%s3214_s2 + $0x40] sm:$0xff] }
 0x2b7   : > { %917 = vmatpush.bf16.msra.mxu1 %v2196_v51 }
 0x2b9   : > { %695 = vmatpush.bf16.msrb.mxu3 %v688_v8 }
 0x2bb   : > { %918 = vmatpush.bf16.msra.mxu1 %v2195_v53 }
 0x2bd   : > { %696 = vmatpush.bf16.msrb.mxu3 %v687_v22 }
 0x2bf   : > { %919 = vmatpush.bf16.msra.mxu1 %v2194_v57 }
 0x2c1   : > { %697 = vmatpush.bf16.msrb.mxu3 %v686_v25 }
 0x2c3   : > { %920 = vmatpush.bf16.msra.mxu1 %v2193_v11 }
 0x2c4   : > { %2025 = vmatmul.msk.bf16.vlgmr.msrb.gmra.mxu3 %vm288_vm0, %v2520_v15 }
 0x2c7   : > { %921 = vmatpush.bf16.msra.mxu1 %v2192_v16 }
 0x2d4   : > { %2026 = vmatmul.msk.bf16.gmra.mxu3 %vm288_vm0, %v2517_v14 }
 0x2e4   : > { %2027 = vmatmul.msk.bf16.gmra.mxu3 %vm288_vm0, %v2511_v12 }
 0x2f4   : > { %2028 = vmatmul.msk.bf16.gmra.mxu3 %vm288_vm0, %v2514_v13 }
 0x347   : > { %v699_v26 = vpop.f32.mrf.mxu3 }
 0x34f   : > { %v701_v28 = vpop.f32.mrf.mxu3 }
 0x350   : > { %v2273_v29 = vpack.i.bf16 %v701_v28, %v699_v26  ;;  %v719_v6 = vpack.c.bf16 %v701_v28, %v699_v26 }
 0x352   : > { %2274 = vrot.lane.b32.xlu2 %v2273_v29, %s2431_s28 }
 0x357   : > { %v704_v30 = vpop.f32.mrf.mxu3 }
 0x35f   : > { %v706_v10 = vpop.f32.mrf.mxu3 }
 0x360   : > { %v2283_v9 = vpack.i.bf16 %v706_v10, %v704_v30  ;;  %v720_v40 = vpack.c.bf16 %v706_v10, %v704_v30 }
 0x362   : > { %2284 = vrot.lane.b32.xlu1 %v2283_v9, %s2431_s28 }
 0x367   : > { %v709_v32 = vpop.f32.mrf.mxu3 }
 0x36f   : > { %v711_v34 = vpop.f32.mrf.mxu3 }
 0x370   : > { %v2293_v35 = vpack.i.bf16 %v711_v34, %v709_v32  ;;  %v721_v39 = vpack.c.bf16 %v711_v34, %v709_v32 }
 0x377   : > { %v714_v36 = vpop.f32.mrf.mxu3 }
 0x37f   : > { %v716_v37 = vpop.f32.mrf.mxu3 }
 0x380   : > { %v722_v38 = vpack.c.bf16 %v716_v37, %v714_v36  ;;  %v2303_v52 = vpack.i.bf16 %v716_v37, %v714_v36 }
 0x382   : > { %727 = vmatpush.bf16.msrb.mxu0 %v722_v38 }
 0x386   : > { %728 = vmatpush.bf16.msrb.mxu0 %v721_v39 }
 0x38a   : > { %729 = vmatpush.bf16.msrb.mxu0 %v720_v40 }
 0x38e   : > { %730 = vmatpush.bf16.msrb.mxu0 %v719_v6 }
 0x391   : > { %2029 = vmatmul.msk.bf16.vlgmr.msrb.gmra.mxu0 %vm288_vm0, %v2520_v15 }
 0x3a1   : > { %2030 = vmatmul.msk.bf16.gmra.mxu0 %vm288_vm0, %v2517_v14 }
 0x3ac   : > { %v2275_v8 = vpop.permute.xlu2 %2274 }
 0x3ad   : > { %v2277_v20 = vunpack.i.h.bf16 %v2275_v8  ;;  %v2276_v22 = vunpack.i.l.bf16 %v2275_v8 }
 0x3af   : > { %v833_v29 = vsel %vm443_vm1, %v2690_v24, %v2277_v20  ;;  %v832_v30 = vsel %vm443_vm1, %v2688_v23, %v2276_v22 }
 0x3b1   : > { %2031 = vmatmul.msk.bf16.gmra.mxu0 %vm288_vm0, %v2511_v12 }
 0x3c1   : > { %2032 = vmatmul.msk.bf16.gmra.mxu0 %vm288_vm0, %v2514_v13 }
 0x3d4   : > { %v2285_v34 = vpop.permute.xlu1 %2284 }
 0x3d5   : > { %v2287_v36 = vunpack.i.h.bf16 %v2285_v34  ;;  %v2286_v37 = vunpack.i.l.bf16 %v2285_v34 }
 0x3d7   : > { %v835_v40 = vsel %vm443_vm1, %v2684_v19, %v2287_v36 }
 0x40e   : > { %v732_v41 = vpop.f32.mrf.mxu0 }
 0x40f   : > { %v752_v42 = vmul.f32 2.0, %v732_v41 }
 0x411   : > { %v760_v45 = vsub.f32 %v752_v42, %v2688_v23 }
 0x416   : > { %v734_v44 = vpop.f32.mrf.mxu0 }
 0x417   : > { %v753_v43 = vmul.f32 2.0, %v734_v44 }
 0x419   : > { %v761_v46 = vsub.f32 %v753_v43, %v2690_v24  ;;  %v834_v24 = vsel %vm443_vm1, %v2682_v17, %v2286_v37 }
 0x41b   : > { %v2278_v47 = vpack.i.bf16 %v761_v46, %v760_v45 }
 0x41d   : > { %2279 = vrot.lane.b32.xlu0 %v2278_v47, %s2432_s29 }
 0x41e   : > { %v737_v15 = vpop.f32.mrf.mxu0 }
 0x41f   : > { %v754_v48 = vmul.f32 2.0, %v737_v15 }
 0x421   : > { %v762_v49 = vsub.f32 %v754_v48, %v2682_v17 }
 0x425   : > { %2294 = vrot.lane.b32.xlu0 %v2293_v35, %s2431_s28 }
 0x426   : > { %v739_v14 = vpop.f32.mrf.mxu0 }
 0x427   : > { %v755_v12 = vmul.f32 2.0, %v739_v14 }
 0x429   : > { %v763_v13 = vsub.f32 %v755_v12, %v2684_v19 }
 0x42b   : > { %v2288_v4 = vpack.i.bf16 %v763_v13, %v762_v49 }
 0x42d   : > { %2289 = vrot.lane.b32.xlu2 %v2288_v4, %s2432_s29 }
 0x42e   : > { %v742_v50 = vpop.f32.mrf.mxu0 }
 0x42f   : > { %v756_v54 = vmul.f32 2.0, %v742_v50 }
 0x431   : > { %v764_v0 = vsub.f32 %v756_v54, %v2676_v3 }
 0x435   : > { %2304 = vrot.lane.b32.xlu2 %v2303_v52, %s2431_s28 }
 0x436   : > { %v744_v55 = vpop.f32.mrf.mxu0 }
 0x437   : > { %v757_v1 = vmul.f32 2.0, %v744_v55 }
 0x439   : > { %v765_v58 = vsub.f32 %v757_v1, %v2678_v5 }
 0x43b   : > { %v2298_v59 = vpack.i.bf16 %v765_v58, %v764_v0 }
 0x43d   : > { %2299 = vrot.lane.b32.xlu1 %v2298_v59, %s2432_s29  ;;  %v865_v59 = vperm.slane %v2603_v56, 1 }
 0x43e   : > { %v747_v7 = vpop.f32.mrf.mxu0 }
 0x43f   : > { %v758_v60 = vmul.f32 2.0, %v747_v7 }
 0x441   : > { %v766_v18 = vsub.f32 %v758_v60, %v2670_v61 }
 0x446   : > { %v749_v27 = vpop.f32.mrf.mxu0 }
 0x447   : > { %v759_v33 = vmul.f32 2.0, %v749_v27 }
 0x449   : > { %v767_v21 = vsub.f32 %v759_v33, %v2672_v62 }
 0x44b   : > { %v2308_v63 = vpack.i.bf16 %v767_v21, %v766_v18 }
 0x44d   : > { %2309 = vrot.lane.b32.xlu0 %v2308_v63, %s2432_s29 }
 0x487   : > { %v2290_v35 = vpop.permute.xlu2 %2289 }
 0x488   : > { %v2292_v38 = vunpack.i.h.bf16 %v2290_v35  ;;  %v2291_v39 = vunpack.i.l.bf16 %v2290_v35 }
 0x48a   : > { %v842_v23 = vsel %vm288_vm0, %v834_v24, %v2291_v39  ;;  %v843_v6 = vsel %vm288_vm0, %v835_v40, %v2292_v38 }
 0x48b   : > { %v849_v41 = vpack.c.bf16 %v843_v6, %v842_v23 }
 0x48f   : > { %v2280_v25 = vpop.permute.xlu0 %2279  ;;  %v2305_v12 = vpop.permute.xlu2 %2304 }
 0x490   : > { %v2282_v26 = vunpack.i.h.bf16 %v2280_v25  ;;  %v2281_v28 = vunpack.i.l.bf16 %v2280_v25  ;;  %v2307_v49 = vunpack.i.h.bf16 %v2305_v12  ;;  %v2306_v13 = vunpack.i.l.bf16 %v2305_v12 }
 0x492   : > { %v841_v10 = vsel %vm288_vm0, %v833_v29, %v2282_v26  ;;  %v840_v9 = vsel %vm288_vm0, %v832_v30, %v2281_v28  ;;  %v839_v51 = vsel %vm443_vm1, %v2672_v62, %v2307_v49 }
 0x493   : > { %v848_v32 = vpack.c.bf16 %v841_v10, %v840_v9 }
 0x495   : > { %2069 = vmatmul.msk.bf16.vlgmr.msra.gmra.mxu1 %vm513_vm2, %v848_v32 }
 0x497   : > { %v2295_v42 = vpop.permute.xlu0 %2294 }
 0x498   : > { %v2297_v44 = vunpack.i.h.bf16 %v2295_v42  ;;  %v2296_v43 = vunpack.i.l.bf16 %v2295_v42 }
 0x49a   : > { %v837_v15 = vsel %vm443_vm1, %v2678_v5, %v2297_v44  ;;  %v836_v19 = vsel %vm443_vm1, %v2676_v3, %v2296_v43  ;;  %v838_v5 = vsel %vm443_vm1, %v2670_v61, %v2306_v13 }
 0x4a5   : > { %2070 = vmatmul.msk.bf16.gmra.mxu1 %vm513_vm2, %v849_v41 }
 0x4af   : > { %v2300_v45 = vpop.permute.xlu1 %2299 }
 0x4b0   : > { %v2302_v46 = vunpack.i.h.bf16 %v2300_v45  ;;  %v2301_v47 = vunpack.i.l.bf16 %v2300_v45 }
 0x4b2   : > { %v844_v17 = vsel %vm288_vm0, %v836_v19, %v2301_v47  ;;  %v845_v48 = vsel %vm288_vm0, %v837_v15, %v2302_v46 }
 0x4b3   : > { %v850_v14 = vpack.c.bf16 %v845_v48, %v844_v17 }
 0x4b5   : > { %2071 = vmatmul.msk.bf16.gmra.mxu1 %vm513_vm2, %v850_v14 }
 0x4bf   : > { %v2310_v4 = vpop.permute.xlu0 %2309 }
 0x4c0   : > { %v2312_v2 = vunpack.i.h.bf16 %v2310_v4  ;;  %v2311_v50 = vunpack.i.l.bf16 %v2310_v4 }
 0x4c2   : > { %v846_v3 = vsel %vm288_vm0, %v838_v5, %v2311_v50  ;;  %v847_v52 = vsel %vm288_vm0, %v839_v51, %v2312_v2 }
 0x4c3   : > { %v851_v53 = vpack.c.bf16 %v847_v52, %v846_v3 }
 0x4c5   : > { %2072 = vmatmul.msk.bf16.gmra.mxu1 %vm513_vm2, %v851_v53 }
 0x512   : > { %v923_v54 = vpop.f32.mrf.mxu1 }
 0x513   : > { %v924_v60 = vadd.f32 %v923_v54, %v865_v59 }
 0x515   : > { %v951_v18 = vmul.f32 0.01, %v924_v60  ;;  %vm943_vm3 = vcmp.gt.f32.partialorder %v924_v60, 0.0 }
 0x517   : > { %v2775_v8 = vsel %vm943_vm3, %v924_v60, %v951_v18 }
 0x518   : > { %v989_v29 = vmul.f32 %v2775_v8, %v2775_v8  ;;  %v967_v35 = vsel %vm443_vm1, %v2775_v8, 0.0 }
 0x51a   : > { %v925_v55 = vpop.f32.mrf.mxu1  ;;  %v997_v23 = vsel %vm443_vm1, %v989_v29, 0.0 }
 0x51b   : > { %v926_v7 = vadd.f32 %v925_v55, %v865_v59 }
 0x51d   : > { %v952_v27 = vmul.f32 0.01, %v926_v7  ;;  %vm944_vm15 = vcmp.gt.f32.partialorder %v926_v7, 0.0 }
 0x51f   : > { %v2773_v57 = vsel %vm944_vm15, %v926_v7, %v952_v27 }
 0x520   : > { %v990_v25 = vmul.f32 %v2773_v57, %v2773_v57  ;;  %v968_v30 = vsel %vm443_vm1, %v2773_v57, 0.0 }
 0x521   : > { %v969_v39 = vadd.f32 %v968_v30, %v967_v35 }
 0x522   : > { %v928_v1 = vpop.f32.mrf.mxu1  ;;  %v998_v36 = vsel %vm443_vm1, %v990_v25, 0.0 }
 0x523   : > { %v929_v62 = vadd.f32 %v928_v1, %v865_v59  ;;  %v999_v44 = vadd.f32 %v998_v36, %v997_v23 }
 0x525   : > { %v953_v21 = vmul.f32 0.01, %v929_v62  ;;  %vm945_vm4 = vcmp.gt.f32.partialorder %v929_v62, 0.0 }
 0x527   : > { %v2777_v20 = vsel %vm945_vm4, %v929_v62, %v953_v21 }
 0x528   : > { %v991_v10 = vmul.f32 %v2777_v20, %v2777_v20  ;;  %v970_v37 = vsel %vm443_vm1, %v2777_v20, 0.0 }
 0x529   : > { %v971_v43 = vadd.f32 %v970_v37, %v969_v39 }
 0x52a   : > { %v930_v0 = vpop.f32.mrf.mxu1  ;;  %v1000_v6 = vsel %vm443_vm1, %v991_v10, 0.0 }
 0x52b   : > { %v931_v33 = vadd.f32 %v930_v0, %v865_v59  ;;  %v1001_v19 = vadd.f32 %v1000_v6, %v999_v44  ;;  %v2829_v6 = vld [vmem:[%s3215_s3 + $0x8] sm:$0xff] }
 0x52d   : > { %v954_v11 = vmul.f32 0.01, %v931_v33  ;;  %vm946_vm5 = vcmp.gt.f32.partialorder %v931_v33, 0.0 }
 0x52f   : > { %v2781_v26 = vsel %vm946_vm5, %v931_v33, %v954_v11 }
 0x530   : > { %v992_v38 = vmul.f32 %v2781_v26, %v2781_v26  ;;  %v972_v41 = vsel %vm443_vm1, %v2781_v26, 0.0 }
 0x531   : > { %v973_v17 = vadd.f32 %v972_v41, %v971_v43 }
 0x532   : > { %v933_v58 = vpop.f32.mrf.mxu1  ;;  %v1002_v46 = vsel %vm443_vm1, %v992_v38, 0.0 }
 0x533   : > { %v934_v63 = vadd.f32 %v933_v58, %v865_v59  ;;  %v1003_v13 = vadd.f32 %v1002_v46, %v1001_v19  ;;  %v1058_v19 = vperm.slane %v2829_v6, 0 }
 0x535   : > { %v955_v22 = vmul.f32 0.01, %v934_v63  ;;  %vm947_vm6 = vcmp.gt.f32.partialorder %v934_v63, 0.0 }
 0x537   : > { %v2789_v32 = vsel %vm947_vm6, %v934_v63, %v955_v22 }
 0x538   : > { %v993_v42 = vmul.f32 %v2789_v32, %v2789_v32  ;;  %v974_v47 = vsel %vm443_vm1, %v2789_v32, 0.0 }
 0x539   : > { %v975_v4 = vadd.f32 %v974_v47, %v973_v17 }
 0x53a   : > { %v935_v61 = vpop.f32.mrf.mxu1  ;;  %v1004_v48 = vsel %vm443_vm1, %v993_v42, 0.0  ;;  %v1049_v42 = vperm.slane %v2603_v56, 5 }
 0x53b   : > { %v936_v16 = vadd.f32 %v935_v61, %v865_v59  ;;  %v1005_v5 = vadd.f32 %v1004_v48, %v1003_v13 }
 0x53d   : > { %v956_v28 = vmul.f32 0.01, %v936_v16  ;;  %vm948_vm7 = vcmp.gt.f32.partialorder %v936_v16, 0.0 }
 0x53f   : > { %v2798_v40 = vsel %vm948_vm7, %v936_v16, %v956_v28 }
 0x540   : > { %v994_v15 = vmul.f32 %v2798_v40, %v2798_v40  ;;  %v976_v14 = vsel %vm443_vm1, %v2798_v40, 0.0 }
 0x541   : > { %v977_v3 = vadd.f32 %v976_v14, %v975_v4 }
 0x542   : > { %v938_v9 = vpop.f32.mrf.mxu1  ;;  %v1006_v50 = vsel %vm443_vm1, %v994_v15, 0.0 }
 0x543   : > { %v939_v34 = vadd.f32 %v938_v9, %v865_v59  ;;  %v1007_v54 = vadd.f32 %v1006_v50, %v1005_v5 }
 0x545   : > { %vm949_vm8 = vcmp.gt.f32.partialorder %v939_v34, 0.0  ;;  %v957_v24 = vmul.f32 0.01, %v939_v34 }
 0x547   : > { %v2806_v45 = vsel %vm949_vm8, %v939_v34, %v957_v24 }
 0x548   : > { %v995_v12 = vmul.f32 %v2806_v45, %v2806_v45  ;;  %v978_v51 = vsel %vm443_vm1, %v2806_v45, 0.0 }
 0x549   : > { %v979_v55 = vadd.f32 %v978_v51, %v977_v3 }
 0x54a   : > { %v940_v49 = vpop.f32.mrf.mxu1  ;;  %v1008_v53 = vsel %vm443_vm1, %v995_v12, 0.0 }
 0x54b   : > { %v941_v2 = vadd.f32 %v940_v49, %v865_v59  ;;  %v1009_v7 = vadd.f32 %v1008_v53, %v1007_v54 }
 0x54d   : > { %vm950_vm9 = vcmp.gt.f32.partialorder %v941_v2, 0.0  ;;  %v958_v52 = vmul.f32 0.01, %v941_v2 }
 0x54f   : > { %v966_v1 = vsel %vm950_vm9, %v941_v2, %v958_v52 }
 0x550   : > { %v980_v0 = vsel %vm443_vm1, %v966_v1, 0.0  ;;  %v996_v58 = vmul.f32 %v966_v1, %v966_v1 }
 0x551   : > { %v981_v60 = vadd.f32 %v980_v0, %v979_v55 }
 0x552   : > { %v1010_v59 = vsel %vm443_vm1, %v996_v58, 0.0 }
 0x553   : > { %v982_v62 = vrot.slane %v981_v60, 4  ;;  %v1011_v27 = vadd.f32 %v1010_v59, %v1009_v7 }
 0x555   : > { %v983_v33 = vadd.f32 %v982_v62, %v981_v60  ;;  %v1012_v61 = vrot.slane %v1011_v27, 4 }
 0x557   : > { %v984_v18 = vrot.slane %v983_v33, 2  ;;  %v1013_v21 = vadd.f32 %v1012_v61, %v1011_v27  ;;  %v2870_v61 = vld [vmem:[%s2506_s27 + $0x8] sm:$0xff] }
 0x559   : > { %v985_v63 = vadd.f32 %v984_v18, %v983_v33  ;;  %v1014_v11 = vrot.slane %v1013_v21, 2  ;;  %v2865_v33 = vld [vmem:[%s2506_s27] sm:$0xff]  ;;  %v2875_v18 = vld [vmem:[%s2506_s27 + $0x10] sm:$0xff] }
 0x55b   : > { %v986_v16 = vrot.slane %v985_v63, 1  ;;  %v1015_v22 = vadd.f32 %v1014_v11, %v1013_v21  ;;  %v2880_v21 = vld [vmem:[%s2506_s27 + $0x18] sm:$0xff] }
 0x55d   : > { %v987_v25 = vadd.f32 %v986_v16, %v985_v63  ;;  %v1016_v28 = vrot.slane %v1015_v22, 1 }
 0x55f   : > { %v988_v29 = vmul.f32 %v987_v25, %v2657_v31  ;;  %v1017_v30 = vadd.f32 %v1016_v28, %v1015_v22 }
 0x561   : > { %v1018_v10 = vmul.f32 %v1017_v30, %v2657_v31  ;;  %v1019_v9 = vmul.f32 %v988_v29, %v988_v29  ;;  %v1029_v44 = vsub.f32 %v966_v1, %v988_v29  ;;  %v1028_v43 = vsub.f32 %v2806_v45, %v988_v29 }
 0x562   : > { %v1026_v46 = vsub.f32 %v2789_v32, %v988_v29  ;;  %v1027_v47 = vsub.f32 %v2798_v40, %v988_v29  ;;  %v1024_v17 = vsub.f32 %v2777_v20, %v988_v29  ;;  %v1025_v48 = vsub.f32 %v2781_v26, %v988_v29 }
 0x563   : > { %v1020_v34 = vsub.f32 %v1018_v10, %v1019_v9  ;;  %v1022_v32 = vsub.f32 %v2775_v8, %v988_v29  ;;  %v1023_v40 = vsub.f32 %v2773_v57, %v988_v29 }
 0x565   : > { %v1021_v35 = vmax.f32 %v1020_v34, 0.0 }
 0x567   : > { %v1030_v36 = vadd.f32 1e-05, %v1021_v35 }
 0x569   : > { %2397 = vrsqrt.f32 %v1030_v36  ;;  %vm1037_vm11 = vweird.f32 %v1030_v36 }
 0x56f   : > { %v2398_v37 = vpop.eup %2397 }
 0x570   : > { %v1032_v38 = vmul.f32 %v2398_v37, %v1030_v36  ;;  %vm1038_vm10 = vweird.f32 %v2398_v37 }
 0x571   : > { %vm1039_vm12 = vmor %vm1037_vm11, %vm1038_vm10 }
 0x572   : > { %v1033_v39 = vmul.f32 %v2398_v37, %v1032_v38 }
 0x574   : > { %v1034_v24 = vmul.f32 0.5, %v1033_v39 }
 0x576   : > { %v1035_v23 = vsub.f32 1.5, %v1034_v24 }
 0x578   : > { %v1036_v41 = vmul.f32 %v2398_v37, %v1035_v23 }
 0x57a   : > { %v1040_v15 = vsel %vm1039_vm12, %v2398_v37, %v1036_v41 }
 0x57b   : > { %v1048_v14 = vmul.f32 %v1040_v15, %v1029_v44  ;;  %v1047_v12 = vmul.f32 %v1040_v15, %v1028_v43  ;;  %v1045_v49 = vmul.f32 %v1040_v15, %v1026_v46  ;;  %v1046_v13 = vmul.f32 %v1040_v15, %v1027_v47 }
 0x57c   : > { %v1043_v56 = vmul.f32 %v1040_v15, %v1024_v17  ;;  %v1044_v4 = vmul.f32 %v1040_v15, %v1025_v48  ;;  %v1041_v26 = vmul.f32 %v1040_v15, %v1022_v32  ;;  %v1042_v52 = vmul.f32 %v1040_v15, %v1023_v40 }
 0x57d   : > { %v1057_v2 = vmul.f32 %v1049_v42, %v1048_v14  ;;  %v1056_v50 = vmul.f32 %v1049_v42, %v1047_v12  ;;  %v1054_v45 = vmul.f32 %v1049_v42, %v1045_v49  ;;  %v1055_v51 = vmul.f32 %v1049_v42, %v1046_v13  ;;  %v2203_v12 = vld [vmem:[%s3214_s2 + $0x88] sm:$0xff]  ;;  %v2202_v13 = vld [vmem:[%s3214_s2 + $0x80] sm:$0xff] }
 0x57e   : > { %v1052_v20 = vmul.f32 %v1049_v42, %v1043_v56  ;;  %v1053_v1 = vmul.f32 %v1049_v42, %v1044_v4  ;;  %v1050_v8 = vmul.f32 %v1049_v42, %v1041_v26  ;;  %v1051_v7 = vmul.f32 %v1049_v42, %v1042_v52  ;;  %1297 = vmatpush.bf16.msra.mxu0 %v2203_v12  ;;  %v2201_v4 = vld [vmem:[%s3214_s2 + $0x78] sm:$0xff]  ;;  %v2199_v26 = vld [vmem:[%s3214_s2 + $0x68] sm:$0xff] }
 0x57f   : > { %v2840_v5 = vadd.f32 %v1058_v19, %v1056_v50  ;;  %v2842_v3 = vadd.f32 %v1058_v19, %v1057_v2  ;;  %v2846_v54 = vadd.f32 %v1058_v19, %v1054_v45  ;;  %v2848_v55 = vadd.f32 %v1058_v19, %v1055_v51  ;;  %v2200_v51 = vld [vmem:[%s3214_s2 + $0x70] sm:$0xff] }
 0x580   : > { %v2852_v0 = vadd.f32 %v1058_v19, %v1052_v20  ;;  %v2854_v58 = vadd.f32 %v1058_v19, %v1053_v1  ;;  %v2858_v59 = vadd.f32 %v1058_v19, %v1050_v8  ;;  %v2860_v62 = vadd.f32 %v1058_v19, %v1051_v7 }
 0x581   : > { %v1070_v53 = vpack.c.bf16 %v2842_v3, %v2840_v5  ;;  %v1069_v57 = vpack.c.bf16 %v2848_v55, %v2846_v54 }
 0x582   : > { %v1068_v60 = vpack.c.bf16 %v2854_v58, %v2852_v0  ;;  %v1067_v27 = vpack.c.bf16 %v2860_v62, %v2858_v59  ;;  %1298 = vmatpush.bf16.msra.mxu0 %v2202_v13 }
 0x583   : > { %1075 = vmatpush.bf16.msra.mxu3 %v1070_v53 }
 0x586   : > { %1299 = vmatpush.bf16.msra.mxu0 %v2201_v4 }
 0x587   : > { %1076 = vmatpush.bf16.msra.mxu3 %v1069_v57 }
 0x58a   : > { %1300 = vmatpush.bf16.msra.mxu0 %v2200_v51 }
 0x58b   : > { %1077 = vmatpush.bf16.msra.mxu3 %v1068_v60 }
 0x58e   : > { %1301 = vmatpush.bf16.msra.mxu0 %v2199_v26 }
 0x58f   : > { %1078 = vmatpush.bf16.msra.mxu3 %v1067_v27  ;;  %v2198_v27 = vld [vmem:[%s3214_s2 + $0x60] sm:$0xff] }
 0x592   : > { %2073 = vmatmul.msk.bf16.vlgmr.msra.gmra.mxu3 %vm288_vm0, %v2865_v33  ;;  %1302 = vmatpush.bf16.msra.mxu0 %v2198_v27 }
 0x5a2   : > { %2074 = vmatmul.msk.bf16.gmra.mxu3 %vm288_vm0, %v2870_v61 }
 0x5b2   : > { %2075 = vmatmul.msk.bf16.gmra.mxu3 %vm288_vm0, %v2875_v18 }
 0x5c2   : > { %2076 = vmatmul.msk.bf16.gmra.mxu3 %vm288_vm0, %v2880_v21 }
 0x615   : > { %v1080_v63 = vpop.f32.mrf.mxu3 }
 0x61d   : > { %v1082_v11 = vpop.f32.mrf.mxu3 }
 0x61e   : > { %v2313_v16 = vpack.i.bf16 %v1082_v11, %v1080_v63  ;;  %v1100_v38 = vpack.c.bf16 %v1082_v11, %v1080_v63 }
 0x620   : > { %2314 = vrot.lane.b32.xlu1 %v2313_v16, %s2431_s28 }
 0x625   : > { %v1085_v22 = vpop.f32.mrf.mxu3 }
 0x62d   : > { %v1087_v25 = vpop.f32.mrf.mxu3 }
 0x62e   : > { %v2323_v28 = vpack.i.bf16 %v1087_v25, %v1085_v22  ;;  %v1101_v37 = vpack.c.bf16 %v1087_v25, %v1085_v22 }
 0x630   : > { %2324 = vrot.lane.b32.xlu0 %v2323_v28, %s2431_s28 }
 0x635   : > { %v1090_v29 = vpop.f32.mrf.mxu3 }
 0x63d   : > { %v1092_v30 = vpop.f32.mrf.mxu3 }
 0x63e   : > { %v2333_v10 = vpack.i.bf16 %v1092_v30, %v1090_v29  ;;  %v1102_v36 = vpack.c.bf16 %v1092_v30, %v1090_v29 }
 0x645   : > { %v1095_v9 = vpop.f32.mrf.mxu3 }
 0x64d   : > { %v1097_v34 = vpop.f32.mrf.mxu3 }
 0x64e   : > { %v1103_v35 = vpack.c.bf16 %v1097_v34, %v1095_v9  ;;  %v2343_v56 = vpack.i.bf16 %v1097_v34, %v1095_v9 }
 0x650   : > { %1108 = vmatpush.bf16.msra.mxu2 %v1103_v35 }
 0x654   : > { %1109 = vmatpush.bf16.msra.mxu2 %v1102_v36 }
 0x658   : > { %1110 = vmatpush.bf16.msra.mxu2 %v1101_v37 }
 0x65c   : > { %1111 = vmatpush.bf16.msra.mxu2 %v1100_v38 }
 0x65f   : > { %2077 = vmatmul.msk.bf16.vlgmr.msra.gmra.mxu2 %vm288_vm0, %v2865_v33 }
 0x66f   : > { %2078 = vmatmul.msk.bf16.gmra.mxu2 %vm288_vm0, %v2870_v61 }
 0x67f   : > { %2079 = vmatmul.msk.bf16.gmra.mxu2 %vm288_vm0, %v2875_v18 }
 0x68f   : > { %2080 = vmatmul.msk.bf16.gmra.mxu2 %vm288_vm0, %v2880_v21 }
 0x692   : > { %v2315_v63 = vpop.permute.xlu1 %2314 }
 0x693   : > { %v2317_v11 = vunpack.i.h.bf16 %v2315_v63  ;;  %v2316_v16 = vunpack.i.l.bf16 %v2315_v63 }
 0x695   : > { %v1214_v29 = vsel %vm443_vm1, %v2860_v62, %v2317_v11  ;;  %v1213_v30 = vsel %vm443_vm1, %v2858_v59, %v2316_v16 }
 0x6a2   : > { %v2325_v35 = vpop.permute.xlu0 %2324 }
 0x6a3   : > { %v2327_v36 = vunpack.i.h.bf16 %v2325_v35  ;;  %v2326_v37 = vunpack.i.l.bf16 %v2325_v35 }
 0x6e2   : > { %v1113_v39 = vpop.f32.mrf.mxu2 }
 0x6e3   : > { %v1133_v24 = vmul.f32 2.0, %v1113_v39 }
 0x6e5   : > { %v1141_v42 = vsub.f32 %v1133_v24, %v2858_v59 }
 0x6ea   : > { %v1115_v23 = vpop.f32.mrf.mxu2 }
 0x6eb   : > { %v1134_v41 = vmul.f32 2.0, %v1115_v23  ;;  %v1216_v23 = vsel %vm443_vm1, %v2854_v58, %v2327_v36 }
 0x6ed   : > { %v1142_v44 = vsub.f32 %v1134_v41, %v2860_v62  ;;  %v1215_v62 = vsel %vm443_vm1, %v2852_v0, %v2326_v37 }
 0x6ef   : > { %v2318_v43 = vpack.i.bf16 %v1142_v44, %v1141_v42 }
 0x6f1   : > { %2319 = vrot.lane.b32.xlu2 %v2318_v43, %s2432_s29 }
 0x6f2   : > { %v1118_v46 = vpop.f32.mrf.mxu2 }
 0x6f3   : > { %v1135_v47 = vmul.f32 2.0, %v1118_v46 }
 0x6f5   : > { %v1143_v17 = vsub.f32 %v1135_v47, %v2852_v0 }
 0x6f9   : > { %2334 = vrot.lane.b32.xlu2 %v2333_v10, %s2431_s28 }
 0x6fa   : > { %v1120_v15 = vpop.f32.mrf.mxu2 }
 0x6fb   : > { %v1136_v19 = vmul.f32 2.0, %v1120_v15 }
 0x6fd   : > { %v1144_v48 = vsub.f32 %v1136_v19, %v2854_v58 }
 0x6ff   : > { %v2328_v14 = vpack.i.bf16 %v1144_v48, %v1143_v17 }
 0x701   : > { %2329 = vrot.lane.b32.xlu1 %v2328_v14, %s2432_s29 }
 0x702   : > { %v1123_v49 = vpop.f32.mrf.mxu2 }
 0x703   : > { %v1137_v2 = vmul.f32 2.0, %v1123_v49 }
 0x705   : > { %v1145_v32 = vsub.f32 %v1137_v2, %v2846_v54 }
 0x709   : > { %2344 = vrot.lane.b32.xlu1 %v2343_v56, %s2431_s28 }
 0x70a   : > { %v1125_v50 = vpop.f32.mrf.mxu2 }
 0x70b   : > { %v1138_v45 = vmul.f32 2.0, %v1125_v50 }
 0x70d   : > { %v1146_v40 = vsub.f32 %v1138_v45, %v2848_v55 }
 0x70f   : > { %v2338_v20 = vpack.i.bf16 %v1146_v40, %v1145_v32 }
 0x711   : > { %2339 = vrot.lane.b32.xlu0 %v2338_v20, %s2432_s29 }
 0x712   : > { %v1128_v52 = vpop.f32.mrf.mxu2 }
 0x713   : > { %v1139_v53 = vmul.f32 2.0, %v1128_v52 }
 0x715   : > { %v1147_v57 = vsub.f32 %v1139_v53, %v2840_v5  ;;  %v2957_v53 = vld [vmem:[%s3215_s3] sm:$0xff] }
 0x71a   : > { %v1130_v1 = vpop.f32.mrf.mxu2 }
 0x71b   : > { %v1140_v8 = vmul.f32 2.0, %v1130_v1 }
 0x71d   : > { %v1148_v7 = vsub.f32 %v1140_v8, %v2842_v3 }
 0x71f   : > { %v2348_v60 = vpack.i.bf16 %v1148_v7, %v1147_v57 }
 0x721   : > { %2349 = vrot.lane.b32.xlu2 %v2348_v60, %s2432_s29 }
 0x74b   : > { %v2320_v22 = vpop.permute.xlu2 %2319 }
 0x74c   : > { %v2322_v25 = vunpack.i.h.bf16 %v2320_v22  ;;  %v2321_v28 = vunpack.i.l.bf16 %v2320_v22 }
 0x74e   : > { %v1222_v10 = vsel %vm288_vm0, %v1214_v29, %v2322_v25  ;;  %v1221_v9 = vsel %vm288_vm0, %v1213_v30, %v2321_v28 }
 0x74f   : > { %v1229_v34 = vpack.c.bf16 %v1222_v10, %v1221_v9 }
 0x751   : > { %2117 = vmatmul.msk.bf16.vlgmr.msra.gmra.mxu0 %vm513_vm2, %v1229_v34 }
 0x753   : > { %v2335_v44 = vpop.permute.xlu2 %2334 }
 0x754   : > { %v2337_v43 = vunpack.i.h.bf16 %v2335_v44  ;;  %v2336_v46 = vunpack.i.l.bf16 %v2335_v44 }
 0x756   : > { %v1218_v17 = vsel %vm443_vm1, %v2848_v55, %v2337_v43  ;;  %v1217_v58 = vsel %vm443_vm1, %v2846_v54, %v2336_v46 }
 0x773   : > { %v2330_v38 = vpop.permute.xlu1 %2329 }
 0x774   : > { %v2332_v39 = vunpack.i.h.bf16 %v2330_v38  ;;  %v2331_v24 = vunpack.i.l.bf16 %v2330_v38 }
 0x776   : > { %v1223_v59 = vsel %vm288_vm0, %v1215_v62, %v2331_v24  ;;  %v1224_v41 = vsel %vm288_vm0, %v1216_v23, %v2332_v39 }
 0x777   : > { %v1230_v42 = vpack.c.bf16 %v1224_v41, %v1223_v59 }
 0x779   : > { %2118 = vmatmul.msk.bf16.gmra.mxu0 %vm513_vm2, %v1230_v42 }
 0x77b   : > { %v2345_v12 = vpop.permute.xlu1 %2344  ;;  %v2350_v56 = vpop.permute.xlu2 %2349 }
 0x77c   : > { %v2347_v49 = vunpack.i.h.bf16 %v2345_v12  ;;  %v2346_v13 = vunpack.i.l.bf16 %v2345_v12  ;;  %v2352_v4 = vunpack.i.h.bf16 %v2350_v56  ;;  %v2351_v2 = vunpack.i.l.bf16 %v2350_v56 }
 0x77e   : > { %v1220_v50 = vsel %vm443_vm1, %v2842_v3, %v2347_v49  ;;  %v1219_v55 = vsel %vm443_vm1, %v2840_v5, %v2346_v13  ;;  %v1246_v3 = vperm.slane %v2957_v53, 2 }
 0x77f   : > { %v1227_v54 = vsel %vm288_vm0, %v1219_v55, %v2351_v2  ;;  %v1228_v45 = vsel %vm288_vm0, %v1220_v50, %v2352_v4 }
 0x780   : > { %v1232_v51 = vpack.c.bf16 %v1228_v45, %v1227_v54 }
 0x783   : > { %v2340_v47 = vpop.permute.xlu0 %2339 }
 0x784   : > { %v2342_v15 = vunpack.i.h.bf16 %v2340_v47  ;;  %v2341_v19 = vunpack.i.l.bf16 %v2340_v47 }
 0x786   : > { %v1225_v0 = vsel %vm288_vm0, %v1217_v58, %v2341_v19  ;;  %v1226_v48 = vsel %vm288_vm0, %v1218_v17, %v2342_v15 }
 0x787   : > { %v1231_v14 = vpack.c.bf16 %v1226_v48, %v1225_v0 }
 0x789   : > { %2119 = vmatmul.msk.bf16.gmra.mxu0 %vm513_vm2, %v1231_v14 }
 0x799   : > { %2120 = vmatmul.msk.bf16.gmra.mxu0 %vm513_vm2, %v1232_v51 }
 0x7ce   : > { %v1304_v32 = vpop.f32.mrf.mxu0 }
 0x7cf   : > { %v1305_v1 = vadd.f32 %v1304_v32, %v1246_v3 }
 0x7d1   : > { %v2962_v27 = vmax.f32 %v1305_v1, 0.0 }
 0x7d3   : > { %v1354_v28 = vmul.f32 %v2962_v27, %v2962_v27  ;;  %v1332_v9 = vsel %vm443_vm1, %v2962_v27, 0.0 }
 0x7d5   : > { %v1362_v24 = vsel %vm443_vm1, %v1354_v28, 0.0 }
 0x7d6   : > { %v1306_v40 = vpop.f32.mrf.mxu0 }
 0x7d7   : > { %v1307_v5 = vadd.f32 %v1306_v40, %v1246_v3 }
 0x7d9   : > { %v2960_v57 = vmax.f32 %v1307_v5, 0.0 }
 0x7db   : > { %v1355_v16 = vmul.f32 %v2960_v57, %v2960_v57  ;;  %v1333_v29 = vsel %vm443_vm1, %v2960_v57, 0.0 }
 0x7dc   : > { %v1334_v23 = vadd.f32 %v1333_v29, %v1332_v9 }
 0x7dd   : > { %v1363_v34 = vsel %vm443_vm1, %v1355_v16, 0.0 }
 0x7de   : > { %v1364_v44 = vadd.f32 %v1363_v34, %v1362_v24 }
 0x7f6   : > { %v1309_v20 = vpop.f32.mrf.mxu0 }
 0x7f7   : > { %v1310_v8 = vadd.f32 %v1309_v20, %v1246_v3 }
 0x7f9   : > { %v2964_v63 = vmax.f32 %v1310_v8, 0.0 }
 0x7fb   : > { %v1356_v30 = vmul.f32 %v2964_v63, %v2964_v63  ;;  %v1335_v36 = vsel %vm443_vm1, %v2964_v63, 0.0 }
 0x7fc   : > { %v1336_v43 = vadd.f32 %v1335_v36, %v1334_v23 }
 0x7fd   : > { %v1365_v62 = vsel %vm443_vm1, %v1356_v30, 0.0 }
 0x7fe   : > { %v1311_v26 = vpop.f32.mrf.mxu0  ;;  %v1366_v19 = vadd.f32 %v1365_v62, %v1364_v44 }
 0x7ff   : > { %v1312_v60 = vadd.f32 %v1311_v26, %v1246_v3 }
 0x801   : > { %v2968_v22 = vmax.f32 %v1312_v60, 0.0 }
 0x803   : > { %v1357_v37 = vmul.f32 %v2968_v22, %v2968_v22  ;;  %v1337_v59 = vsel %vm443_vm1, %v2968_v22, 0.0 }
 0x804   : > { %v1338_v17 = vadd.f32 %v1337_v59, %v1336_v43 }
 0x805   : > { %v1367_v46 = vsel %vm443_vm1, %v1357_v37, 0.0 }
 0x806   : > { %v1314_v52 = vpop.f32.mrf.mxu0  ;;  %v1368_v14 = vadd.f32 %v1367_v46, %v1366_v19  ;;  %v1414_v46 = vperm.slane %v2957_v53, 6 }
 0x807   : > { %v1315_v11 = vadd.f32 %v1314_v52, %v1246_v3 }
 0x809   : > { %v2976_v10 = vmax.f32 %v1315_v11, 0.0 }
 0x80b   : > { %v1358_v41 = vmul.f32 %v2976_v10, %v2976_v10  ;;  %v1339_v47 = vsel %vm443_vm1, %v2976_v10, 0.0 }
 0x80c   : > { %v1340_v12 = vadd.f32 %v1339_v47, %v1338_v17 }
 0x80d   : > { %v1369_v58 = vsel %vm443_vm1, %v1358_v41, 0.0 }
 0x80e   : > { %v1316_v7 = vpop.f32.mrf.mxu0  ;;  %v1370_v2 = vadd.f32 %v1369_v58, %v1368_v14  ;;  %v1423_v58 = vperm.slane %v2829_v6, 1 }
 0x80f   : > { %v1317_v25 = vadd.f32 %v1316_v7, %v1246_v3 }
 0x811   : > { %v2985_v38 = vmax.f32 %v1317_v25, 0.0 }
 0x813   : > { %v1359_v15 = vmul.f32 %v2985_v38, %v2985_v38  ;;  %v1341_v0 = vsel %vm443_vm1, %v2985_v38, 0.0 }
 0x814   : > { %v1342_v50 = vadd.f32 %v1341_v0, %v1340_v12 }
 0x815   : > { %v1371_v13 = vsel %vm443_vm1, %v1359_v15, 0.0 }
 0x816   : > { %v1319_v35 = vpop.f32.mrf.mxu0  ;;  %v1372_v45 = vadd.f32 %v1371_v13, %v1370_v2 }
 0x817   : > { %v1320_v39 = vadd.f32 %v1319_v35, %v1246_v3 }
 0x819   : > { %v2993_v42 = vmax.f32 %v1320_v39, 0.0 }
 0x81b   : > { %v1360_v48 = vmul.f32 %v2993_v42, %v2993_v42  ;;  %v1343_v56 = vsel %vm443_vm1, %v2993_v42, 0.0 }
 0x81c   : > { %v1344_v51 = vadd.f32 %v1343_v56, %v1342_v50 }
 0x81d   : > { %v1373_v55 = vsel %vm443_vm1, %v1360_v48, 0.0 }
 0x81e   : > { %v1321_v49 = vpop.f32.mrf.mxu0  ;;  %v1374_v20 = vadd.f32 %v1373_v55, %v1372_v45 }
 0x81f   : > { %v1322_v4 = vadd.f32 %v1321_v49, %v1246_v3 }
 0x821   : > { %v1331_v54 = vmax.f32 %v1322_v4, 0.0 }
 0x823   : > { %v1345_v32 = vsel %vm443_vm1, %v1331_v54, 0.0  ;;  %v1361_v40 = vmul.f32 %v1331_v54, %v1331_v54 }
 0x824   : > { %v1346_v26 = vadd.f32 %v1345_v32, %v1344_v51 }
 0x825   : > { %v1375_v52 = vsel %vm443_vm1, %v1361_v40, 0.0 }
 0x826   : > { %v1347_v5 = vrot.slane %v1346_v26, 4  ;;  %v1376_v1 = vadd.f32 %v1375_v52, %v1374_v20 }
 0x828   : > { %v1348_v8 = vadd.f32 %v1347_v5, %v1346_v26  ;;  %v1377_v7 = vrot.slane %v1376_v1, 4 }
 0x82a   : > { %v1349_v60 = vrot.slane %v1348_v8, 2  ;;  %v1378_v3 = vadd.f32 %v1377_v7, %v1376_v1 }
 0x82c   : > { %v1350_v11 = vadd.f32 %v1349_v60, %v1348_v8  ;;  %v1379_v16 = vrot.slane %v1378_v3, 2 }
 0x82e   : > { %v1351_v25 = vrot.slane %v1350_v11, 1  ;;  %v1380_v28 = vadd.f32 %v1379_v16, %v1378_v3 }
 0x830   : > { %v1352_v29 = vadd.f32 %v1351_v25, %v1350_v11  ;;  %v1381_v30 = vrot.slane %v1380_v28, 1 }
 0x832   : > { %v1353_v9 = vmul.f32 %v1352_v29, %v2657_v31  ;;  %v1382_v34 = vadd.f32 %v1381_v30, %v1380_v28 }
 0x834   : > { %v1383_v35 = vmul.f32 %v1382_v34, %v2657_v31  ;;  %v1384_v36 = vmul.f32 %v1353_v9, %v1353_v9  ;;  %v1394_v47 = vsub.f32 %v1331_v54, %v1353_v9  ;;  %v1393_v15 = vsub.f32 %v2993_v42, %v1353_v9 }
 0x835   : > { %v1391_v31 = vsub.f32 %v2976_v10, %v1353_v9  ;;  %v1392_v19 = vsub.f32 %v2985_v38, %v1353_v9  ;;  %v1389_v0 = vsub.f32 %v2964_v63, %v1353_v9  ;;  %v1390_v48 = vsub.f32 %v2968_v22, %v1353_v9 }
 0x836   : > { %v1385_v37 = vsub.f32 %v1383_v35, %v1384_v36  ;;  %v1387_v10 = vsub.f32 %v2962_v27, %v1353_v9  ;;  %v1388_v38 = vsub.f32 %v2960_v57, %v1353_v9 }
 0x838   : > { %v1386_v39 = vmax.f32 %v1385_v37, 0.0 }
 0x83a   : > { %v1395_v24 = vadd.f32 1e-05, %v1386_v39 }
 0x83c   : > { %2399 = vrsqrt.f32 %v1395_v24  ;;  %vm1402_vm14 = vweird.f32 %v1395_v24 }
 0x842   : > { %v2400_v23 = vpop.eup %2399 }
 0x843   : > { %v1397_v62 = vmul.f32 %v2400_v23, %v1395_v24  ;;  %vm1403_vm13 = vweird.f32 %v2400_v23 }
 0x844   : > { %vm1404_vm15 = vmor %vm1402_vm14, %vm1403_vm13 }
 0x845   : > { %v1398_v59 = vmul.f32 %v2400_v23, %v1397_v62 }
 0x847   : > { %v1399_v41 = vmul.f32 0.5, %v1398_v59 }
 0x849   : > { %v1400_v44 = vsub.f32 1.5, %v1399_v41 }
 0x84b   : > { %v1401_v43 = vmul.f32 %v2400_v23, %v1400_v44 }
 0x84d   : > { %v1405_v17 = vsel %vm1404_vm15, %v2400_v23, %v1401_v43 }
 0x84e   : > { %v1413_v14 = vmul.f32 %v1405_v17, %v1394_v47  ;;  %v1412_v12 = vmul.f32 %v1405_v17, %v1393_v15  ;;  %v1410_v49 = vmul.f32 %v1405_v17, %v1391_v31  ;;  %v1411_v13 = vmul.f32 %v1405_v17, %v1392_v19 }
 0x84f   : > { %v1408_v56 = vmul.f32 %v1405_v17, %v1389_v0  ;;  %v1409_v4 = vmul.f32 %v1405_v17, %v1390_v48  ;;  %v1406_v22 = vmul.f32 %v1405_v17, %v1387_v10  ;;  %v1407_v45 = vmul.f32 %v1405_v17, %v1388_v38  ;;  %v2208_v48 = vld [vmem:[%s3214_s2 + $0xb0] sm:$0xff] }
 0x850   : > { %v1422_v2 = vmul.f32 %v1414_v46, %v1413_v14  ;;  %v1421_v50 = vmul.f32 %v1414_v46, %v1412_v12  ;;  %v1419_v42 = vmul.f32 %v1414_v46, %v1410_v49  ;;  %v1420_v55 = vmul.f32 %v1414_v46, %v1411_v13  ;;  %v2207_v14 = vld [vmem:[%s3214_s2 + $0xa8] sm:$0xff] }
 0x851   : > { %v1417_v63 = vmul.f32 %v1414_v46, %v1408_v56  ;;  %v1418_v20 = vmul.f32 %v1414_v46, %v1409_v4  ;;  %v1415_v26 = vmul.f32 %v1414_v46, %v1406_v22  ;;  %v1416_v5 = vmul.f32 %v1414_v46, %v1407_v45  ;;  %v2206_v56 = vld [vmem:[%s3214_s2 + $0xa0] sm:$0xff] }
 0x852   : > { %v3022_v54 = vadd.f32 %v1423_v58, %v1422_v2  ;;  %v3024_v6 = vadd.f32 %v1423_v58, %v1421_v50  ;;  %v3028_v32 = vadd.f32 %v1423_v58, %v1419_v42  ;;  %v3030_v40 = vadd.f32 %v1423_v58, %v1420_v55  ;;  %v2205_v42 = vld [vmem:[%s3214_s2 + $0x98] sm:$0xff] }
 0x853   : > { %v3034_v27 = vadd.f32 %v1423_v58, %v1417_v63  ;;  %v3036_v52 = vadd.f32 %v1423_v58, %v1418_v20  ;;  %v3040_v8 = vadd.f32 %v1423_v58, %v1415_v26  ;;  %v3042_v7 = vadd.f32 %v1423_v58, %v1416_v5  ;;  %v2209_v58 = vld [vmem:[%s3214_s2 + $0xb8] sm:$0xff]  ;;  %v2204_v20 = vld [vmem:[%s3214_s2 + $0x90] sm:$0xff] }
 0x854   : > { %v1435_v51 = vpack.c.bf16 %v3022_v54, %v3024_v6  ;;  %v1434_v57 = vpack.c.bf16 %v3030_v40, %v3028_v32  ;;  %1662 = vmatpush.bf16.msrb.mxu2 %v2209_v58 }
 0x855   : > { %v1433_v1 = vpack.c.bf16 %v3036_v52, %v3034_v27  ;;  %v1432_v60 = vpack.c.bf16 %v3042_v7, %v3040_v8 }
 0x856   : > { %1440 = vmatpush.bf16.msrb.mxu1 %v1435_v51 }
 0x858   : > { %1663 = vmatpush.bf16.msrb.mxu2 %v2208_v48 }
 0x85a   : > { %1441 = vmatpush.bf16.msrb.mxu1 %v1434_v57 }
 0x85c   : > { %1664 = vmatpush.bf16.msrb.mxu2 %v2207_v14  ;;  %v1611_v14 = vperm.slane %v2957_v53, 3 }
 0x85e   : > { %1442 = vmatpush.bf16.msrb.mxu1 %v1433_v1 }
 0x860   : > { %1665 = vmatpush.bf16.msrb.mxu2 %v2206_v56 }
 0x862   : > { %1443 = vmatpush.bf16.msrb.mxu1 %v1432_v60 }
 0x864   : > { %1666 = vmatpush.bf16.msrb.mxu2 %v2205_v42 }
 0x865   : > { %2121 = vmatmul.msk.bf16.vlgmr.msrb.gmra.mxu1 %vm288_vm0, %v2865_v33 }
 0x868   : > { %1667 = vmatpush.bf16.msrb.mxu2 %v2204_v20 }
 0x875   : > { %2122 = vmatmul.msk.bf16.gmra.mxu1 %vm288_vm0, %v2870_v61 }
 0x885   : > { %2123 = vmatmul.msk.bf16.gmra.mxu1 %vm288_vm0, %v2875_v18 }
 0x895   : > { %2124 = vmatmul.msk.bf16.gmra.mxu1 %vm288_vm0, %v2880_v21 }
 0x8e2   : > { %v1445_v3 = vpop.f32.mrf.mxu1 }
 0x8ea   : > { %v1447_v11 = vpop.f32.mrf.mxu1 }
 0x8eb   : > { %v2353_v16 = vpack.i.bf16 %v1447_v11, %v1445_v3  ;;  %v1465_v62 = vpack.c.bf16 %v1447_v11, %v1445_v3 }
 0x8ed   : > { %2354 = vrot.lane.b32.xlu0 %v2353_v16, %s2431_s28 }
 0x8f2   : > { %v1450_v25 = vpop.f32.mrf.mxu1 }
 0x8fa   : > { %v1452_v28 = vpop.f32.mrf.mxu1 }
 0x8fb   : > { %v2363_v29 = vpack.i.bf16 %v1452_v28, %v1450_v25  ;;  %v1466_v23 = vpack.c.bf16 %v1452_v28, %v1450_v25 }
 0x8fd   : > { %2364 = vrot.lane.b32.xlu2 %v2363_v29, %s2431_s28 }
 0x902   : > { %v1455_v30 = vpop.f32.mrf.mxu1 }
 0x90a   : > { %v1457_v9 = vpop.f32.mrf.mxu1 }
 0x90b   : > { %v2373_v34 = vpack.i.bf16 %v1457_v9, %v1455_v30  ;;  %v1467_v24 = vpack.c.bf16 %v1457_v9, %v1455_v30 }
 0x912   : > { %v1460_v35 = vpop.f32.mrf.mxu1 }
 0x91a   : > { %v1462_v36 = vpop.f32.mrf.mxu1 }
 0x91b   : > { %v2383_v37 = vpack.i.bf16 %v1462_v36, %v1460_v35  ;;  %v1468_v39 = vpack.c.bf16 %v1462_v36, %v1460_v35 }
 0x91d   : > { %1473 = vmatpush.bf16.msrb.mxu3 %v1468_v39 }
 0x921   : > { %1474 = vmatpush.bf16.msrb.mxu3 %v1467_v24 }
 0x925   : > { %1475 = vmatpush.bf16.msrb.mxu3 %v1466_v23 }
 0x929   : > { %1476 = vmatpush.bf16.msrb.mxu3 %v1465_v62 }
 0x92c   : > { %2125 = vmatmul.msk.bf16.vlgmr.msrb.gmra.mxu3 %vm288_vm0, %v2865_v33 }
 0x93c   : > { %2126 = vmatmul.msk.bf16.gmra.mxu3 %vm288_vm0, %v2870_v61 }
 0x94c   : > { %2127 = vmatmul.msk.bf16.gmra.mxu3 %vm288_vm0, %v2875_v18 }
 0x957   : > { %v2365_v30 = vpop.permute.xlu2 %2364 }
 0x958   : > { %v2367_v9 = vunpack.i.h.bf16 %v2365_v30 }
 0x95a   : > { %v1581_v39 = vsel %vm443_vm1, %v3036_v52, %v2367_v9 }
 0x95c   : > { %2128 = vmatmul.msk.bf16.gmra.mxu3 %vm288_vm0, %v2880_v21 }
 0x95f   : > { %v2355_v26 = vpop.permute.xlu0 %2354 }
 0x960   : > { %v2357_v57 = vunpack.i.h.bf16 %v2355_v26  ;;  %v2356_v5 = vunpack.i.l.bf16 %v2355_v26 }
 0x962   : > { %v1579_v11 = vsel %vm443_vm1, %v3042_v7, %v2357_v57  ;;  %v1578_v16 = vsel %vm443_vm1, %v3040_v8, %v2356_v5 }
 0x9af   : > { %v1478_v59 = vpop.f32.mrf.mxu3 }
 0x9b0   : > { %v1498_v41 = vmul.f32 2.0, %v1478_v59 }
 0x9b2   : > { %v1506_v46 = vsub.f32 %v1498_v41, %v3040_v8 }
 0x9b7   : > { %v1480_v44 = vpop.f32.mrf.mxu3 }
 0x9b8   : > { %v1499_v43 = vmul.f32 2.0, %v1480_v44 }
 0x9ba   : > { %v1507_v47 = vsub.f32 %v1499_v43, %v3042_v7 }
 0x9bc   : > { %v2358_v15 = vpack.i.bf16 %v1507_v47, %v1506_v46 }
 0x9be   : > { %2359 = vrot.lane.b32.xlu1 %v2358_v15, %s2432_s29 }
 0x9bf   : > { %v1483_v33 = vpop.f32.mrf.mxu3 }
 0x9c0   : > { %v1500_v31 = vmul.f32 2.0, %v1483_v33 }
 0x9c2   : > { %v1508_v19 = vsub.f32 %v1500_v31, %v3034_v27 }
 0x9c6   : > { %2374 = vrot.lane.b32.xlu1 %v2373_v34, %s2431_s28  ;;  %v2366_v34 = vunpack.i.l.bf16 %v2365_v30 }
 0x9c7   : > { %v1485_v61 = vpop.f32.mrf.mxu3 }
 0x9c8   : > { %v1501_v18 = vmul.f32 2.0, %v1485_v61  ;;  %v1580_v7 = vsel %vm443_vm1, %v3034_v27, %v2366_v34  ;;  %v1820_v34 = vld [vmem:[%s3216_s4 + $0x18] sm:$0xff] }
 0x9c9   : > { %1858 = vmatpush.msrb.mxu0 %v1820_v34 }
 0x9ca   : > { %v1509_v21 = vsub.f32 %v1501_v18, %v3036_v52 }
 0x9cc   : > { %v2368_v17 = vpack.i.bf16 %v1509_v21, %v1508_v19 }
 0x9ce   : > { %2369 = vrot.lane.b32.xlu0 %v2368_v17, %s2432_s29 }
 0x9cf   : > { %v1488_v0 = vpop.f32.mrf.mxu3 }
 0x9d0   : > { %v1502_v12 = vmul.f32 2.0, %v1488_v0 }
 0x9d2   : > { %v1510_v4 = vsub.f32 %v1502_v12, %v3028_v32 }
 0x9d6   : > { %2384 = vrot.lane.b32.xlu0 %v2383_v37, %s2431_s28 }
 0x9d7   : > { %v1490_v49 = vpop.f32.mrf.mxu3 }
 0x9d8   : > { %v1503_v13 = vmul.f32 2.0, %v1490_v49 }
 0x9da   : > { %v1511_v2 = vsub.f32 %v1503_v13, %v3030_v40 }
 0x9dc   : > { %v2378_v50 = vpack.i.bf16 %v1511_v2, %v1510_v4 }
 0x9de   : > { %2379 = vrot.lane.b32.xlu2 %v2378_v50, %s2432_s29 }
 0x9df   : > { %v1493_v55 = vpop.f32.mrf.mxu3 }
 0x9e0   : > { %v1504_v10 = vmul.f32 2.0, %v1493_v55 }
 0x9e2   : > { %v1512_v22 = vsub.f32 %v1504_v10, %v3024_v6 }
 0x9e7   : > { %v1495_v38 = vpop.f32.mrf.mxu3 }
 0x9e8   : > { %v1505_v63 = vmul.f32 2.0, %v1495_v38 }
 0x9ea   : > { %v1513_v45 = vsub.f32 %v1505_v63, %v3022_v54 }
 0x9ec   : > { %v2388_v51 = vpack.i.bf16 %v1513_v45, %v1512_v22 }
 0x9ee   : > { %2389 = vrot.lane.b32.xlu1 %v2388_v51, %s2432_s29 }
 0xa30   : > { %v2360_v1 = vpop.permute.xlu1 %2359 }
 0xa31   : > { %v2362_v60 = vunpack.i.h.bf16 %v2360_v1  ;;  %v2361_v3 = vunpack.i.l.bf16 %v2360_v1 }
 0xa33   : > { %v1587_v25 = vsel %vm288_vm0, %v1579_v11, %v2362_v60  ;;  %v1586_v28 = vsel %vm288_vm0, %v1578_v16, %v2361_v3 }
 0xa34   : > { %v1594_v29 = vpack.c.bf16 %v1587_v25, %v1586_v28 }
 0xa36   : > { %2165 = vmatmul.msk.bf16.vlgmr.msrb.gmra.mxu2 %vm513_vm2, %v1594_v29 }
 0xa38   : > { %v2375_v62 = vpop.permute.xlu1 %2374  ;;  %v2380_v44 = vpop.permute.xlu2 %2379 }
 0xa39   : > { %v2377_v59 = vunpack.i.h.bf16 %v2375_v62  ;;  %v2376_v41 = vunpack.i.l.bf16 %v2375_v62  ;;  %v2382_v43 = vunpack.i.h.bf16 %v2380_v44  ;;  %v2381_v46 = vunpack.i.l.bf16 %v2380_v44 }
 0xa3b   : > { %v1583_v47 = vsel %vm443_vm1, %v3030_v40, %v2377_v59  ;;  %v1582_v52 = vsel %vm443_vm1, %v3028_v32, %v2376_v41 }
 0xa3c   : > { %v1590_v27 = vsel %vm288_vm0, %v1582_v52, %v2381_v46  ;;  %v1591_v15 = vsel %vm288_vm0, %v1583_v47, %v2382_v43 }
 0xa3d   : > { %v1596_v33 = vpack.c.bf16 %v1591_v15, %v1590_v27 }
 0xa40   : > { %v2370_v35 = vpop.permute.xlu0 %2369 }
 0xa41   : > { %v2372_v36 = vunpack.i.h.bf16 %v2370_v35  ;;  %v2371_v37 = vunpack.i.l.bf16 %v2370_v35  ;;  %v1819_v35 = vld [vmem:[%s3216_s4 + $0x10] sm:$0xff] }
 0xa42   : > { %1859 = vmatpush.msrb.mxu0 %v1819_v35 }
 0xa43   : > { %v1588_v8 = vsel %vm288_vm0, %v1580_v7, %v2371_v37  ;;  %v1589_v24 = vsel %vm288_vm0, %v1581_v39, %v2372_v36  ;;  %v1818_v36 = vld [vmem:[%s3216_s4 + $0x8] sm:$0xff]  ;;  %v1817_v37 = vld [vmem:[%s3216_s4] sm:$0xff] }
 0xa44   : > { %v1595_v23 = vpack.c.bf16 %v1589_v24, %v1588_v8  ;;  %1860 = vmatpush.msrb.mxu0 %v1818_v36 }
 0xa46   : > { %2166 = vmatmul.msk.bf16.gmra.mxu2 %vm513_vm2, %v1595_v23  ;;  %1861 = vmatpush.msrb.mxu0 %v1817_v37 }
 0xa48   : > { %v2385_v31 = vpop.permute.xlu0 %2384 }
 0xa49   : > { %v2387_v61 = vunpack.i.h.bf16 %v2385_v31  ;;  %v2386_v18 = vunpack.i.l.bf16 %v2385_v31 }
 0xa4b   : > { %v1585_v58 = vsel %vm443_vm1, %v3022_v54, %v2387_v61  ;;  %v1584_v40 = vsel %vm443_vm1, %v3024_v6, %v2386_v18 }
 0xa56   : > { %2167 = vmatmul.msk.bf16.gmra.mxu2 %vm513_vm2, %v1596_v33 }
 0xa60   : > { %v2390_v19 = vpop.permute.xlu1 %2389 }
 0xa61   : > { %v2392_v21 = vunpack.i.h.bf16 %v2390_v19  ;;  %v2391_v17 = vunpack.i.l.bf16 %v2390_v19 }
 0xa63   : > { %v1593_v32 = vsel %vm288_vm0, %v1585_v58, %v2392_v21  ;;  %v1592_v0 = vsel %vm288_vm0, %v1584_v40, %v2391_v17 }
 0xa64   : > { %v1597_v48 = vpack.c.bf16 %v1593_v32, %v1592_v0 }
 0xa66   : > { %2168 = vmatmul.msk.bf16.gmra.mxu2 %vm513_vm2, %v1597_v48 }
 0xab9   : > { %v1669_v12 = vpop.f32.mrf.mxu2 }
 0xaba   : > { %v3125_v49 = vadd.f32 %v1669_v12, %v1611_v14 }
 0xabc   : > { %v1689_v13 = vmul.f32 %v3125_v49, %v3125_v49 }
 0xabe   : > { %v1697_v54 = vsel %vm443_vm1, %v1689_v13, 0.0 }
 0xabf   : > { %1698 = vadd.xlane.f32.xlu2 %v1697_v54 }
 0xac1   : > { %v1671_v56 = vpop.f32.mrf.mxu2 }
 0xac2   : > { %v3130_v6 = vadd.f32 %v1671_v56, %v1611_v14 }
 0xac4   : > { %v1690_v4 = vmul.f32 %v3130_v6, %v3130_v6 }
 0xac6   : > { %v1700_v2 = vsel %vm443_vm1, %v1690_v4, 0.0 }
 0xac7   : > { %1701 = vadd.xlane.f32.xlu0 %v1700_v2 }
 0xac9   : > { %v1674_v50 = vpop.f32.mrf.mxu2 }
 0xaca   : > { %v3135_v53 = vadd.f32 %v1674_v50, %v1611_v14 }
 0xacc   : > { %v1691_v42 = vmul.f32 %v3135_v53, %v3135_v53 }
 0xace   : > { %v1703_v55 = vsel %vm443_vm1, %v1691_v42, 0.0 }
 0xacf   : > { %1704 = vadd.xlane.f32.xlu1 %v1703_v55 }
 0xad1   : > { %v1676_v10 = vpop.f32.mrf.mxu2 }
 0xad2   : > { %v3140_v38 = vadd.f32 %v1676_v10, %v1611_v14 }
 0xad4   : > { %v1692_v63 = vmul.f32 %v3140_v38, %v3140_v38 }
 0xad6   : > { %v1706_v22 = vsel %vm443_vm1, %v1692_v63, 0.0 }
 0xad7   : > { %1707 = vadd.xlane.f32.xlu2 %v1706_v22 }
 0xad9   : > { %v1679_v45 = vpop.f32.mrf.mxu2 }
 0xada   : > { %v3145_v51 = vadd.f32 %v1679_v45, %v1611_v14 }
 0xadc   : > { %v1693_v20 = vmul.f32 %v3145_v51, %v3145_v51 }
 0xade   : > { %v1709_v26 = vsel %vm443_vm1, %v1693_v20, 0.0 }
 0xadf   : > { %1710 = vadd.xlane.f32.xlu2 %v1709_v26 }
 0xae1   : > { %v1681_v57 = vpop.f32.mrf.mxu2 }
 0xae2   : > { %v3150_v5 = vadd.f32 %v1681_v57, %v1611_v14 }
 0xae4   : > { %v1694_v1 = vmul.f32 %v3150_v5, %v3150_v5 }
 0xae6   : > { %v1712_v60 = vsel %vm443_vm1, %v1694_v1, 0.0 }
 0xae7   : > { %1713 = vadd.xlane.f32.xlu0 %v1712_v60 }
 0xae9   : > { %v1684_v3 = vpop.f32.mrf.mxu2 }
 0xaea   : > { %v3155_v11 = vadd.f32 %v1684_v3, %v1611_v14 }
 0xaec   : > { %v1695_v16 = vmul.f32 %v3155_v11, %v3155_v11 }
 0xaee   : > { %v1715_v25 = vsel %vm443_vm1, %v1695_v16, 0.0 }
 0xaef   : > { %1716 = vadd.xlane.f32.xlu1 %v1715_v25 }
 0xaf1   : > { %v1686_v28 = vpop.f32.mrf.mxu2 }
 0xaf2   : > { %v3160_v29 = vadd.f32 %v1686_v28, %v1611_v14 }
 0xaf4   : > { %v1696_v30 = vmul.f32 %v3160_v29, %v3160_v29 }
 0xaf6   : > { %v1718_v9 = vsel %vm443_vm1, %v1696_v30, 0.0 }
 0xaf7   : > { %1719 = vadd.xlane.f32.xlu2 %v1718_v9 }
 0xb32   : > { %v1699_v39 = vpop.xlane.xlu2 %1698 }
 0xb33   : > { %v1721_v7 = vmax.f32 %v1699_v39, 1e-24 }
 0xb35   : > { %2401 = vrsqrt.f32 %v1721_v7  ;;  %vm1735_vm2 = vweird.f32 %v1721_v7 }
 0xb3a   : > { %v1702_v8 = vpop.xlane.xlu0 %1701 }
 0xb3b   : > { %v2402_v24 = vpop.eup %2401  ;;  %v1722_v23 = vmax.f32 %v1702_v8, 1e-24 }
 0xb3c   : > { %v1730_v62 = vmul.f32 %v2402_v24, %v1721_v7  ;;  %vm1736_vm0 = vweird.f32 %v2402_v24 }
 0xb3d   : > { %2403 = vrsqrt.f32 %v1722_v23  ;;  %vm1737_vm3 = vmor %vm1735_vm2, %vm1736_vm0  ;;  %vm1745_vm5 = vweird.f32 %v1722_v23 }
 0xb3e   : > { %v1731_v59 = vmul.f32 %v2402_v24, %v1730_v62 }
 0xb40   : > { %v1732_v41 = vmul.f32 0.5, %v1731_v59 }
 0xb42   : > { %v1733_v44 = vsub.f32 1.5, %v1732_v41  ;;  %v1705_v43 = vpop.xlane.xlu1 %1704 }
 0xb43   : > { %v2404_v46 = vpop.eup %2403  ;;  %v1723_v47 = vmax.f32 %v1705_v43, 1e-24 }
 0xb44   : > { %v1734_v52 = vmul.f32 %v2402_v24, %v1733_v44  ;;  %v1740_v27 = vmul.f32 %v2404_v46, %v1722_v23  ;;  %vm1746_vm4 = vweird.f32 %v2404_v46 }
 0xb45   : > { %2405 = vrsqrt.f32 %v1723_v47  ;;  %vm1747_vm6 = vmor %vm1745_vm5, %vm1746_vm4  ;;  %vm1755_vm8 = vweird.f32 %v1723_v47 }
 0xb46   : > { %v1738_v15 = vsel %vm1737_vm3, %v2402_v24, %v1734_v52  ;;  %v1741_v33 = vmul.f32 %v2404_v46, %v1740_v27 }
 0xb47   : > { %v1809_v31 = vmul.f32 %v1738_v15, %v3125_v49 }
 0xb48   : > { %v1742_v61 = vmul.f32 0.5, %v1741_v33 }
 0xb49   : > { %2169 = vmatmul.msk.f32.vlgmr.msrb.gmra.mxu0 %vm443_vm1, %v1809_v31 }
 0xb4a   : > { %v1743_v18 = vsub.f32 1.5, %v1742_v61  ;;  %v1708_v19 = vpop.xlane.xlu2 %1707 }
 0xb4b   : > { %v2406_v21 = vpop.eup %2405  ;;  %v1724_v17 = vmax.f32 %v1708_v19, 1e-24 }
 0xb4c   : > { %v1750_v58 = vmul.f32 %v2406_v21, %v1723_v47  ;;  %v1744_v40 = vmul.f32 %v2404_v46, %v1743_v18  ;;  %vm1756_vm7 = vweird.f32 %v2406_v21  ;;  %v2422_v18 = vld [vmem:[%s3215_s3 + $0x8] sm:$0xff] }
 0xb4d   : > { %2407 = vrsqrt.f32 %v1724_v17  ;;  %vm1757_vm9 = vmor %vm1755_vm8, %vm1756_vm7  ;;  %vm1765_vm11 = vweird.f32 %v1724_v17  ;;  %v1821_v19 = vperm.slane %v2422_v18, 2 }
 0xb4e   : > { %v1751_v32 = vmul.f32 %v2406_v21, %v1750_v58  ;;  %v1748_v0 = vsel %vm1747_vm6, %v2404_v46, %v1744_v40 }
 0xb4f   : > { %v1810_v48 = vmul.f32 %v1748_v0, %v3130_v6 }
 0xb50   : > { %v1752_v14 = vmul.f32 0.5, %v1751_v32 }
 0xb51   : > { %2170 = vmatmul.msk.f32.gmra.mxu0 %vm443_vm1, %v1810_v48 }
 0xb52   : > { %v1753_v12 = vsub.f32 1.5, %v1752_v14  ;;  %v1711_v49 = vpop.xlane.xlu2 %1710 }
 0xb53   : > { %v2408_v13 = vpop.eup %2407  ;;  %v1725_v54 = vmax.f32 %v1711_v49, 1e-24 }
 0xb54   : > { %v1760_v56 = vmul.f32 %v2408_v13, %v1724_v17  ;;  %v1754_v4 = vmul.f32 %v2406_v21, %v1753_v12  ;;  %vm1766_vm10 = vweird.f32 %v2408_v13 }
 0xb55   : > { %2409 = vrsqrt.f32 %v1725_v54  ;;  %vm1767_vm12 = vmor %vm1765_vm11, %vm1766_vm10  ;;  %vm1775_vm14 = vweird.f32 %v1725_v54 }
 0xb56   : > { %v1761_v2 = vmul.f32 %v2408_v13, %v1760_v56  ;;  %v1758_v50 = vsel %vm1757_vm9, %v2406_v21, %v1754_v4 }
 0xb57   : > { %v1811_v42 = vmul.f32 %v1758_v50, %v3135_v53 }
 0xb58   : > { %v1762_v55 = vmul.f32 0.5, %v1761_v2 }
 0xb59   : > { %2171 = vmatmul.msk.f32.gmra.mxu0 %vm443_vm1, %v1811_v42 }
 0xb5a   : > { %v1763_v6 = vsub.f32 1.5, %v1762_v55  ;;  %v1714_v10 = vpop.xlane.xlu0 %1713 }
 0xb5b   : > { %v2410_v63 = vpop.eup %2409  ;;  %v1726_v22 = vmax.f32 %v1714_v10, 1e-24 }
 0xb5c   : > { %v1770_v45 = vmul.f32 %v2410_v63, %v1725_v54  ;;  %v1764_v20 = vmul.f32 %v2408_v13, %v1763_v6  ;;  %vm1776_vm13 = vweird.f32 %v2410_v63 }
 0xb5d   : > { %2411 = vrsqrt.f32 %v1726_v22  ;;  %vm1777_vm15 = vmor %vm1775_vm14, %vm1776_vm13  ;;  %vm1785_vm2 = vweird.f32 %v1726_v22 }
 0xb5e   : > { %v1771_v26 = vmul.f32 %v2410_v63, %v1770_v45  ;;  %v1768_v57 = vsel %vm1767_vm12, %v2408_v13, %v1764_v20 }
 0xb5f   : > { %v1812_v1 = vmul.f32 %v1768_v57, %v3140_v38 }
 0xb60   : > { %v1772_v60 = vmul.f32 0.5, %v1771_v26 }
 0xb61   : > { %2172 = vmatmul.msk.f32.gmra.mxu0 %vm443_vm1, %v1812_v1 }
 0xb62   : > { %v1773_v53 = vsub.f32 1.5, %v1772_v60  ;;  %v1717_v3 = vpop.xlane.xlu1 %1716 }
 0xb63   : > { %v2412_v16 = vpop.eup %2411  ;;  %v1727_v25 = vmax.f32 %v1717_v3, 1e-24 }
 0xb64   : > { %v1780_v28 = vmul.f32 %v2412_v16, %v1726_v22  ;;  %v1774_v30 = vmul.f32 %v2410_v63, %v1773_v53  ;;  %vm1786_vm0 = vweird.f32 %v2412_v16 }
 0xb65   : > { %2413 = vrsqrt.f32 %v1727_v25  ;;  %vm1787_vm3 = vmor %vm1785_vm2, %vm1786_vm0  ;;  %vm1795_vm5 = vweird.f32 %v1727_v25 }
 0xb66   : > { %v1781_v9 = vmul.f32 %v2412_v16, %v1780_v28  ;;  %v1778_v34 = vsel %vm1777_vm15, %v2410_v63, %v1774_v30 }
 0xb67   : > { %v1813_v35 = vmul.f32 %v1778_v34, %v3145_v51 }
 0xb68   : > { %v1782_v36 = vmul.f32 0.5, %v1781_v9 }
 0xb69   : > { %2173 = vmatmul.msk.f32.gmra.mxu0 %vm443_vm1, %v1813_v35 }
 0xb6a   : > { %v1783_v38 = vsub.f32 1.5, %v1782_v36  ;;  %v1720_v37 = vpop.xlane.xlu2 %1719 }
 0xb6b   : > { %v2414_v39 = vpop.eup %2413  ;;  %v1728_v7 = vmax.f32 %v1720_v37, 1e-24 }
 0xb6c   : > { %v1784_v8 = vmul.f32 %v2412_v16, %v1783_v38  ;;  %v1790_v24 = vmul.f32 %v2414_v39, %v1727_v25  ;;  %vm1796_vm4 = vweird.f32 %v2414_v39 }
 0xb6d   : > { %2415 = vrsqrt.f32 %v1728_v7  ;;  %vm1797_vm6 = vmor %vm1795_vm5, %vm1796_vm4  ;;  %vm1805_vm8 = vweird.f32 %v1728_v7 }
 0xb6e   : > { %v1791_v23 = vmul.f32 %v2414_v39, %v1790_v24  ;;  %v1788_v62 = vsel %vm1787_vm3, %v2412_v16, %v1784_v8 }
 0xb6f   : > { %v1814_v59 = vmul.f32 %v1788_v62, %v3150_v5 }
 0xb70   : > { %v1792_v41 = vmul.f32 0.5, %v1791_v23 }
 0xb71   : > { %2174 = vmatmul.msk.f32.gmra.mxu0 %vm443_vm1, %v1814_v59 }
 0xb72   : > { %v1793_v51 = vsub.f32 1.5, %v1792_v41 }
 0xb73   : > { %v2416_v44 = vpop.eup %2415 }
 0xb74   : > { %v1794_v43 = vmul.f32 %v2414_v39, %v1793_v51  ;;  %v1800_v46 = vmul.f32 %v2416_v44, %v1728_v7  ;;  %vm1806_vm7 = vweird.f32 %v2416_v44 }
 0xb75   : > { %vm1807_vm9 = vmor %vm1805_vm8, %vm1806_vm7 }
 0xb76   : > { %v1798_v47 = vsel %vm1797_vm6, %v2414_v39, %v1794_v43  ;;  %v1801_v52 = vmul.f32 %v2416_v44, %v1800_v46 }
 0xb77   : > { %v1815_v27 = vmul.f32 %v1798_v47, %v3155_v11 }
 0xb78   : > { %v1802_v15 = vmul.f32 0.5, %v1801_v52 }
 0xb79   : > { %2175 = vmatmul.msk.f32.gmra.mxu0 %vm443_vm1, %v1815_v27 }
 0xb7a   : > { %v1803_v33 = vsub.f32 1.5, %v1802_v15 }
 0xb7c   : > { %v1804_v5 = vmul.f32 %v2416_v44, %v1803_v33 }
 0xb7e   : > { %v1808_v31 = vsel %vm1807_vm9, %v2416_v44, %v1804_v5 }
 0xb7f   : > { %v1816_v61 = vmul.f32 %v1808_v31, %v3160_v29 }
 0xb81   : > { %2176 = vmatmul.msk.f32.gmra.mxu0 %vm443_vm1, %v1816_v61 }
 0xbc6   : > { %v1863_v11 = vpop.f32.mrf.mxu0 }
 0xbc7   : > { %v1864_v21 = vadd.f32 %v1863_v11, %v1821_v19 }
 0xbc9   : > { %1887 = vst.msk [vmem:[%s244_s10] sm:$0xff] %vm443_vm1, %v1864_v21 }
 0xbce   : > { %v1866_v17 = vpop.f32.mrf.mxu0 }
 0xbcf   : > { %v1867_v58 = vadd.f32 %v1866_v17, %v1821_v19 }
 0xbd1   : > { %1888 = vst.msk [vmem:[%s244_s10 + $0x8] sm:$0xff] %vm443_vm1, %v1867_v58 }
 0xbd6   : > { %v1869_v29 = vpop.f32.mrf.mxu0 }
 0xbd7   : > { %v1870_v40 = vadd.f32 %v1869_v29, %v1821_v19 }
 0xbd9   : > { %1889 = vst.msk [vmem:[%s244_s10 + $0x10] sm:$0xff] %vm443_vm1, %v1870_v40 }
 0xbde   : > { %v1872_v32 = vpop.f32.mrf.mxu0 }
 0xbdf   : > { %v1873_v0 = vadd.f32 %v1872_v32, %v1821_v19 }
 0xbe1   : > { %1890 = vst.msk [vmem:[%s244_s10 + $0x18] sm:$0xff] %vm443_vm1, %v1873_v0 }
 0xbe6   : > { %v1875_v48 = vpop.f32.mrf.mxu0 }
 0xbe7   : > { %v1876_v14 = vadd.f32 %v1875_v48, %v1821_v19 }
 0xbe9   : > { %1891 = vst.msk [vmem:[%s244_s10 + $0x20] sm:$0xff] %vm443_vm1, %v1876_v14 }
 0xbee   : > { %v1878_v12 = vpop.f32.mrf.mxu0 }
 0xbef   : > { %v1879_v49 = vadd.f32 %v1878_v12, %v1821_v19 }
 0xbf1   : > { %1892 = vst.msk [vmem:[%s244_s10 + $0x28] sm:$0xff] %vm443_vm1, %v1879_v49 }
 0xbf6   : > { %v1881_v13 = vpop.f32.mrf.mxu0 }
 0xbf7   : > { %v1882_v54 = vadd.f32 %v1881_v13, %v1821_v19 }
 0xbf9   : > { %1893 = vst.msk [vmem:[%s244_s10 + $0x30] sm:$0xff] %vm443_vm1, %v1882_v54 }
 0xbfe   : > { %v1884_v56 = vpop.f32.mrf.mxu0 }
 0xbff   : > { %v1885_v4 = vadd.f32 %v1884_v56, %v1821_v19 }
 0xc01   : > { %1894 = vst.msk [vmem:[%s244_s10 + $0x38] sm:$0xff] %vm443_vm1, %v1885_v4 }
 0xc02 PF: > { %s15_s18 = sadd.s32 1, %s2429_s18  }
 0xc03   : > { %p12_p4 = scmp.ge.s32.totalorder %s15_s18, 4  }
 0xc05   :  { %14 = sbr.rel (!%p12_p4) target bundleno = 1 (0x1), region = 76 }

</bundles_post_ra>
